<compile_context>
chip_gen: v7x
topology: tpu7x:2x2x1
jax: 0.10.0
libtpu: 0.0.40
codegen_flags: <defaults>
</compile_context>

<pallas_src>
import functools

import numpy as np

import jax
import jax.numpy as jnp
from jax.experimental import pallas as pl
from jax.experimental.pallas import tpu as pltpu

H = 20
W = 20
FN = (H * W) // 100          # flatten_neurons = 4


# ---------------------------------------------------------------------------
# The fused kernel (one grid step = nb images)
# ---------------------------------------------------------------------------
def _fused_kernel(x0_ref, x1_ref, x2_ref,
                  w1_ref, b1_ref, w2_ref, b2_ref, w3_ref, b3_ref,
                  wf1_ref, bf1_ref, wf2_ref, bf2_ref,
                  wd1_ref, bd1_ref, e2_ref, t2_ref, wu2_ref, bu2_ref,
                  e1_ref, t1_ref, r3_ref, b3o_ref,
                  out_ref, *, nb):
    f32 = jnp.float32
    r20 = 20 * nb            # conv1 rows (u1-major pooling-window order)
    r4 = 4 * nb              # pooled rows (oi1-major)

    # ---- conv1 (3x3, pad 1) + relu: 3 banded matmuls on pre-shifted rows ---
    h1 = (b1_ref[...]
          + jnp.dot(x0_ref[0], w1_ref[0], preferred_element_type=f32)
          + jnp.dot(x1_ref[0], w1_ref[1], preferred_element_type=f32)
          + jnp.dot(x2_ref[0], w1_ref[2], preferred_element_type=f32))
    h1 = jnp.maximum(h1, 0.0)                                    # (r20, 240)

    # ---- maxpool 5x5 + argmax: 4 lane-block + 4 row-slab compares ----------
    vbest = h1[:, 0:48]
    vidx = jnp.zeros((r20, 48), f32)
    for v in range(1, 5):
        cand = h1[:, v * 48:(v + 1) * 48]
        hit = cand > vbest
        vbest = jnp.where(hit, cand, vbest)
        vidx = jnp.where(hit, float(v), vidx)
    p1 = vbest[0:r4]
    bv = vidx[0:r4]
    bu = jnp.zeros((r4, 48), f32)
    for u in range(1, 5):
        cand = vbest[u * r4:(u + 1) * r4]
        ci = vidx[u * r4:(u + 1) * r4]
        hit = cand > p1
        p1 = jnp.where(hit, cand, p1)
        bv = jnp.where(hit, ci, bv)
        bu = jnp.where(hit, float(u), bu)
    idx1 = bu * 5.0 + bv                 # (r4, 48), window index u*5+v (f32)

    # ---- conv2 (3x3, pad 1) + relu as one dense per-image matmul -----------
    p1w = jnp.concatenate([p1[oi * nb:(oi + 1) * nb, :] for oi in range(4)],
                          axis=1)                                 # (nb, 192)
    h2 = jnp.dot(p1w, w2_ref[...], preferred_element_type=f32) + b2_ref[...]
    h2 = jnp.maximum(h2, 0.0)                                     # (nb, 384)

    # ---- maxpool 2x2 + argmax: 3 lane-block compares ------------------------
    p2 = h2[:, 0:96]
    idx2 = jnp.zeros((nb, 96), f32)
    for w in range(1, 4):
        cand = h2[:, w * 96:(w + 1) * 96]
        hit = cand > p2
        p2 = jnp.where(hit, cand, p2)
        idx2 = jnp.where(hit, float(w), idx2)

    # ---- conv3 + relu (dense; NCHW flatten folded into output lanes) -------
    h3 = jnp.dot(p2, w3_ref[...], preferred_element_type=f32) + b3_ref[...]
    h3 = jnp.maximum(h3, 0.0)                                     # (nb, 144)

    # ---- fc1 + relu, fc2 + relu (batched) -----------------------------------
    f1 = jnp.maximum(jnp.dot(h3, wf1_ref[...], preferred_element_type=f32)
                     + bf1_ref[...], 0.0)                         # (nb, 48)
    f2 = jnp.maximum(jnp.dot(f1, wf2_ref[...], preferred_element_type=f32)
                     + bf2_ref[...], 0.0)                         # (nb, 144)

    # ---- unconv1 (1x1 conv-T, view folded) ----------------------------------
    u1 = jnp.dot(f2, wd1_ref[...], preferred_element_type=f32) + bd1_ref[...]

    # ---- unpool2: exact index expansion + lane-wise select ------------------
    u1e = jnp.dot(u1, e2_ref[...], preferred_element_type=f32)    # (nb, 384)
    i2e = jnp.dot(idx2, e2_ref[...], preferred_element_type=f32)  # exact ints
    up2 = jnp.where(i2e == t2_ref[...], u1e, 0.0)

    # ---- unconv2 + relu (relu commutes with the unpool5 zero-scatter) -------
    uc2 = jnp.maximum(jnp.dot(up2, wu2_ref[...], preferred_element_type=f32)
                      + bu2_ref[...], 0.0)                        # (nb, 192)
    uc2r = jnp.concatenate([uc2[:, oi * 48:(oi + 1) * 48] for oi in range(4)],
                           axis=0)                                # (r4, 48)

    # ---- unpool5 + unconv3 + sigmoid, batched; single lane-dense store ------
    i1e = jnp.dot(idx1, e1_ref[...], preferred_element_type=f32)  # (r4, 240)
    uce = jnp.dot(uc2r, e1_ref[...], preferred_element_type=f32)  # (r4, 240)
    q = jnp.concatenate(
        [jnp.where(i1e == t1_ref[u:u + 1, :], uce, 0.0) for u in range(5)],
        axis=0)                                                   # (r20, 240)
    ob = jnp.dot(q, r3_ref[...], preferred_element_type=f32) + b3o_ref[...]
    out_ref[0] = 0.5 * (jnp.tanh(0.5 * ob) + 1.0)                 # (r20, 128)


# ---------------------------------------------------------------------------
# Host-side one-time weight preprocessing
# ---------------------------------------------------------------------------
def prepare_kernel_params(params):
    def f(a):
        return np.asarray(a, np.float32)

    c1w, c1b = f(params["conv1_w"]), f(params["conv1_b"])
    c2w, c2b = f(params["conv2_w"]), f(params["conv2_b"])
    c3w, c3b = f(params["conv3_w"]), f(params["conv3_b"])
    u1w, u1b = f(params["unconv1_w"])[:, :, 0, 0], f(params["unconv1_b"])
    u2w, u2b = f(params["unconv2_w"])[:, :, 0, 0], f(params["unconv2_b"])
    u3w, u3b = f(params["unconv3_w"])[:, :, 0, 0], f(params["unconv3_b"])
    f1w, f1b = f(params["fc1_w"]), f(params["fc1_b"])
    f2w, f2b = f(params["fc2_w"]), f(params["fc2_b"])

    # conv1: banded over rows, columns permuted so the 5x5 pool's column
    # candidates sit in 48-lane blocks (lane = v1*48 + oj1*12 + c1).
    W1 = np.zeros((3, 60, 240), np.float32)
    for a in range(3):
        for oj in range(4):
            for v in range(5):
                j = 5 * oj + v
                oc = v * 48 + oj * 12
                for bb in range(3):
                    jin = j + bb - 1
                    if 0 <= jin < 20:
                        for ci in range(3):
                            W1[a, jin * 3 + ci, oc:oc + 12] = c1w[:, ci, a, bb]
    B1 = np.tile(c1b, 20)[None, :]

    # conv2: whole 4x4x12 -> 4x4x24 conv as one dense matrix; output lanes
    # permuted for the 2x2 pool (lane = (u2*2+v2)*96 + (oi2*2+oj2)*24 + c2).
    W2 = np.zeros((192, 384), np.float32)
    for oi2 in range(2):
        for oj2 in range(2):
            for u2 in range(2):
                for v2 in range(2):
                    oi1, oj1 = 2 * oi2 + u2, 2 * oj2 + v2
                    oc = (u2 * 2 + v2) * 96 + (oi2 * 2 + oj2) * 24
                    for a in range(3):
                        for bb in range(3):
                            ii, jj = oi1 + a - 1, oj1 + bb - 1
                            if 0 <= ii < 4 and 0 <= jj < 4:
                                for c1 in range(12):
                                    W2[ii * 48 + jj * 12 + c1, oc:oc + 24] = \
                                        c2w[:, c1, a, bb]
    B2 = np.tile(c2b, 16)[None, :]

    # conv3: dense 2x2x24 -> 2x2x36; output lanes already in NCHW-flatten
    # order (lane = c3*4 + oi*2 + oj), which folds the .view() for fc1.
    W3 = np.zeros((96, 144), np.float32)
    for oi in range(2):
        for oj in range(2):
            q = oi * 2 + oj
            for a in range(3):
                for bb in range(3):
                    ii, jj = oi + a - 1, oj + bb - 1
                    if 0 <= ii < 2 and 0 <= jj < 2:
                        qin = ii * 2 + jj
                        for c3 in range(36):
                            W3[qin * 24:(qin + 1) * 24, c3 * 4 + q] = \
                                c3w[c3, :, a, bb]
    B3 = np.repeat(c3b, 4)[None, :]

    WF1, BF1 = f1w.T.copy(), f1b[None, :]
    WF2, BF2 = f2w.T.copy(), f2b[None, :]

    # unconv1 folded with the (N,36,2,2) view (lane c*4+q2 -> q2*24+c2).
    WD1 = np.zeros((144, 96), np.float32)
    for q2 in range(4):
        for c in range(36):
            WD1[c * 4 + q2, q2 * 24:(q2 + 1) * 24] = u1w[c, :]
    BD1 = np.tile(u1b, 4)[None, :]

    # unpool2: 0/1 lane expansion (2x2 pooled -> 4x4 grid) + window targets.
    E2 = np.zeros((96, 384), np.float32)
    T2 = np.zeros((1, 384), np.float32)
    for oi2 in range(2):
        for oj2 in range(2):
            q2 = oi2 * 2 + oj2
            for u2 in range(2):
                for v2 in range(2):
                    s1 = (2 * oi2 + u2) * 4 + (2 * oj2 + v2)
                    for c2 in range(24):
                        E2[q2 * 24 + c2, s1 * 24 + c2] = 1.0
                    T2[0, s1 * 24:(s1 + 1) * 24] = u2 * 2 + v2

    # unconv2 (1x1, 24->12) per 4x4 position, block-diagonal over positions.
    WU2 = np.zeros((384, 192), np.float32)
    for s1 in range(16):
        for c2 in range(24):
            WU2[s1 * 24 + c2, s1 * 12:(s1 + 1) * 12] = u2w[c2, :]
    BU2 = np.tile(u2b, 16)[None, :]

    # unpool5: 0/1 column expansion (oj1*12+c -> (5*oj1+v)*12+c) + targets.
    E1 = np.zeros((48, 240), np.float32)
    T1 = np.zeros((5, 240), np.float32)
    for oj1 in range(4):
        for v in range(5):
            jcol = 5 * oj1 + v
            for c in range(12):
                E1[oj1 * 12 + c, jcol * 12 + c] = 1.0
            for u in range(5):
                T1[u, jcol * 12:(jcol + 1) * 12] = u * 5 + v

    # unconv3 (12 -> 1), zero-padded to 128 output lanes for a lane-dense
    # store (wrapper slices [:, :20]).
    R3 = np.zeros((240, 128), np.float32)
    for jcol in range(20):
        R3[jcol * 12:(jcol + 1) * 12, jcol] = u3w[:, 0]
    B3O = np.zeros((1, 128), np.float32)
    B3O[0, :20] = u3b[0]

    kp = dict(w1=W1, b1=B1, w2=W2, b2=B2, w3=W3, b3=B3,
              wf1=WF1, bf1=BF1, wf2=WF2, bf2=BF2,
              wd1=WD1, bd1=BD1, e2=E2, t2=T2, wu2=WU2, bu2=BU2,
              e1=E1, t1=T1, r3=R3, b3o=B3O)
    return {k: jnp.asarray(v) for k, v in kp.items()}


# ---------------------------------------------------------------------------
# Forward pass wrapper (single pallas_call, grid over batch)
# ---------------------------------------------------------------------------
def unpooling_net_forward(x_nchw, kp, nb=1):
    N = x_nchw.shape[0]
    assert x_nchw.shape[1:] == (3, H, W)
    assert N % nb == 0
    nblk = N // nb

    # rows = spatial rows (lanes = col*3 + channel); three pre-shifted copies,
    # rows permuted per batch-block to (u1, oi1, m) pooling-window-major order.
    xr = jnp.transpose(x_nchw, (0, 2, 3, 1)).reshape(N, H, 3 * W)
    xp = jnp.pad(xr, ((0, 0), (1, 1), (0, 0)))
    xs = []
    for a in range(3):
        s = xp[:, a:a + H, :]                       # row i -> input row i+a-1
        s = s.reshape(nblk, nb, 4, 5, 3 * W)        # (blk, m, oi1, u1, lane)
        s = jnp.transpose(s, (0, 3, 2, 1, 4))       # (blk, u1, oi1, m, lane)
        xs.append(s.reshape(nblk, 20 * nb, 3 * W))

    names = ["w1", "b1", "w2", "b2", "w3", "b3", "wf1", "bf1", "wf2", "bf2",
             "wd1", "bd1", "e2", "t2", "wu2", "bu2", "e1", "t1", "r3", "b3o"]
    wargs = [kp[k] for k in names]

    def wspec(a):
        nd = a.ndim
        return pl.BlockSpec(a.shape, lambda b, _nd=nd: (0,) * _nd)

    xspec = pl.BlockSpec((1, 20 * nb, 3 * W), lambda b: (b, 0, 0))

    out_raw = pl.pallas_call(
        functools.partial(_fused_kernel, nb=nb),
        out_shape=jax.ShapeDtypeStruct((nblk, 20 * nb, 128), jnp.float32),
        grid=(nblk,),
        in_specs=[xspec, xspec, xspec] + [wspec(a) for a in wargs],
        out_specs=pl.BlockSpec((1, 20 * nb, 128), lambda b: (b, 0, 0)),
        compiler_params=pltpu.CompilerParams(
            dimension_semantics=("parallel",)),
    )(*xs, *wargs)

    # rows per block are (u1, oi1, m); un-permute to (n, i = 5*oi1 + u1, j).
    o = out_raw.reshape(nblk, 5, 4, nb, 128)
    o = jnp.transpose(o, (0, 3, 2, 1, 4)).reshape(N, H, 128)[:, :, :W]
    return o.reshape(N, 1, H, W)


# ---------------------------------------------------------------------------
# Deterministic synthetic parameters (PyTorch layouts)
# ---------------------------------------------------------------------------
def init_params(key):
    fn = FN
    keys = jax.random.split(key, 16)

    def w(k, shape, scale=0.1):
        return scale * jax.random.normal(k, shape, jnp.float32)

    return {
        "conv1_w": w(keys[0], (12, 3, 3, 3)),    "conv1_b": w(keys[1], (12,)),
        "conv2_w": w(keys[2], (24, 12, 3, 3)),   "conv2_b": w(keys[3], (24,)),
        "conv3_w": w(keys[4], (36, 24, 3, 3)),   "conv3_b": w(keys[5], (36,)),
        "unconv1_w": w(keys[6], (36, 24, 1, 1)), "unconv1_b": w(keys[7], (24,)),
        "unconv2_w": w(keys[8], (24, 12, 1, 1)), "unconv2_b": w(keys[9], (12,)),
        "unconv3_w": w(keys[10], (12, 1, 1, 1)), "unconv3_b": w(keys[11], (1,)),
        "fc1_w": w(keys[12], (12 * fn, 36 * fn)), "fc1_b": w(keys[13], (12 * fn,)),
        "fc2_w": w(keys[14], (36 * fn, 12 * fn)), "fc2_b": w(keys[15], (36 * fn,)),
    }


if __name__ == "__main__":
    N = 2                                           # batch; dim_input = (20, 20, 3)
    key = jax.random.PRNGKey(0)
    kx, kpm = jax.random.split(key)
    x = jax.random.normal(kx, (N, 3, H, W), jnp.float32)
    params = init_params(kpm)
    kparams = prepare_kernel_params(params)         # one-time weight folding

    fwd = jax.jit(unpooling_net_forward, static_argnames=("nb",))
    out = fwd(x, kparams, nb=1)        # grid=(2,), "parallel": both v7x cores
    jax.block_until_ready(out)

    assert out.shape == (N, 1, H, W), out.shape
    assert bool(jnp.all(jnp.isfinite(out)))
    assert bool(jnp.all((out >= 0.0) & (out <= 1.0)))   # sigmoid output range
    print("KERNEL_OK")
</pallas_src>

<mosaic_0001>
module attributes {stable_mosaic.version = 11 : i64} {
  func.func @_fused_kernel(%arg0: i32, %arg1: memref<1x20x60xf32, #tpu.memory_space<vmem>>, %arg2: memref<1x20x60xf32, #tpu.memory_space<vmem>>, %arg3: memref<1x20x60xf32, #tpu.memory_space<vmem>>, %arg4: memref<3x60x240xf32, #tpu.memory_space<vmem>>, %arg5: memref<1x240xf32, #tpu.memory_space<vmem>>, %arg6: memref<192x384xf32, #tpu.memory_space<vmem>>, %arg7: memref<1x384xf32, #tpu.memory_space<vmem>>, %arg8: memref<96x144xf32, #tpu.memory_space<vmem>>, %arg9: memref<1x144xf32, #tpu.memory_space<vmem>>, %arg10: memref<144x48xf32, #tpu.memory_space<vmem>>, %arg11: memref<1x48xf32, #tpu.memory_space<vmem>>, %arg12: memref<48x144xf32, #tpu.memory_space<vmem>>, %arg13: memref<1x144xf32, #tpu.memory_space<vmem>>, %arg14: memref<144x96xf32, #tpu.memory_space<vmem>>, %arg15: memref<1x96xf32, #tpu.memory_space<vmem>>, %arg16: memref<96x384xf32, #tpu.memory_space<vmem>>, %arg17: memref<1x384xf32, #tpu.memory_space<vmem>>, %arg18: memref<384x192xf32, #tpu.memory_space<vmem>>, %arg19: memref<1x192xf32, #tpu.memory_space<vmem>>, %arg20: memref<48x240xf32, #tpu.memory_space<vmem>>, %arg21: memref<5x240xf32, #tpu.memory_space<vmem>>, %arg22: memref<240x128xf32, #tpu.memory_space<vmem>>, %arg23: memref<1x128xf32, #tpu.memory_space<vmem>>, %arg24: memref<1x20x128xf32, #tpu.memory_space<vmem>>) attributes {dimension_semantics = [#tpu.dimension_semantics<parallel>], iteration_bounds = array<i64: 2>, scalar_prefetch = 0 : i64, scratch_operands = 0 : i64, tpu.core_type = #tpu.core_type<tc>, window_params = [{transform_indices = @transform_0, window_bounds = array<i64: 1, 20, 60>}, {transform_indices = @transform_1, window_bounds = array<i64: 1, 20, 60>}, {transform_indices = @transform_2, window_bounds = array<i64: 1, 20, 60>}, {pipeline_mode = #tpu.pipeline_mode<synchronous>, transform_indices = @transform_3, window_bounds = array<i64: 3, 60, 240>}, {pipeline_mode = #tpu.pipeline_mode<synchronous>, transform_indices = @transform_4, window_bounds = array<i64: 1, 240>}, {pipeline_mode = #tpu.pipeline_mode<synchronous>, transform_indices = @transform_5, window_bounds = array<i64: 192, 384>}, {pipeline_mode = #tpu.pipeline_mode<synchronous>, transform_indices = @transform_6, window_bounds = array<i64: 1, 384>}, {pipeline_mode = #tpu.pipeline_mode<synchronous>, transform_indices = @transform_7, window_bounds = array<i64: 96, 144>}, {pipeline_mode = #tpu.pipeline_mode<synchronous>, transform_indices = @transform_8, window_bounds = array<i64: 1, 144>}, {pipeline_mode = #tpu.pipeline_mode<synchronous>, transform_indices = @transform_9, window_bounds = array<i64: 144, 48>}, {pipeline_mode = #tpu.pipeline_mode<synchronous>, transform_indices = @transform_10, window_bounds = array<i64: 1, 48>}, {pipeline_mode = #tpu.pipeline_mode<synchronous>, transform_indices = @transform_11, window_bounds = array<i64: 48, 144>}, {pipeline_mode = #tpu.pipeline_mode<synchronous>, transform_indices = @transform_12, window_bounds = array<i64: 1, 144>}, {pipeline_mode = #tpu.pipeline_mode<synchronous>, transform_indices = @transform_13, window_bounds = array<i64: 144, 96>}, {pipeline_mode = #tpu.pipeline_mode<synchronous>, transform_indices = @transform_14, window_bounds = array<i64: 1, 96>}, {pipeline_mode = #tpu.pipeline_mode<synchronous>, transform_indices = @transform_15, window_bounds = array<i64: 96, 384>}, {pipeline_mode = #tpu.pipeline_mode<synchronous>, transform_indices = @transform_16, window_bounds = array<i64: 1, 384>}, {pipeline_mode = #tpu.pipeline_mode<synchronous>, transform_indices = @transform_17, window_bounds = array<i64: 384, 192>}, {pipeline_mode = #tpu.pipeline_mode<synchronous>, transform_indices = @transform_18, window_bounds = array<i64: 1, 192>}, {pipeline_mode = #tpu.pipeline_mode<synchronous>, transform_indices = @transform_19, window_bounds = array<i64: 48, 240>}, {pipeline_mode = #tpu.pipeline_mode<synchronous>, transform_indices = @transform_20, window_bounds = array<i64: 5, 240>}, {pipeline_mode = #tpu.pipeline_mode<synchronous>, transform_indices = @transform_21, window_bounds = array<i64: 240, 128>}, {pipeline_mode = #tpu.pipeline_mode<synchronous>, transform_indices = @transform_22, window_bounds = array<i64: 1, 128>}, {transform_indices = @transform_23, window_bounds = array<i64: 1, 20, 128>}]} {
    %c0 = arith.constant 0 : index
    %c0_0 = arith.constant 0 : index
    %0 = vector.load %arg5[%c0, %c0_0] : memref<1x240xf32, #tpu.memory_space<vmem>>, vector<1x240xf32>
    %c0_1 = arith.constant 0 : index
    %c0_2 = arith.constant 0 : index
    %c0_3 = arith.constant 0 : index
    %1 = vector.load %arg1[%c0_1, %c0_2, %c0_3] : memref<1x20x60xf32, #tpu.memory_space<vmem>>, vector<1x20x60xf32>
    %2 = vector.shape_cast %1 : vector<1x20x60xf32> to vector<20x60xf32>
    %c0_4 = arith.constant 0 : index
    %c0_5 = arith.constant 0 : index
    %c0_6 = arith.constant 0 : index
    %3 = vector.load %arg4[%c0_4, %c0_5, %c0_6] : memref<3x60x240xf32, #tpu.memory_space<vmem>>, vector<1x60x240xf32>
    %4 = vector.shape_cast %3 : vector<1x60x240xf32> to vector<60x240xf32>
    %cst = arith.constant dense<0.000000e+00> : vector<20x240xf32>
    %5 = tpu.matmul %2, %4, %cst {dimension_numbers = #tpu.dot_dimension_numbers<[1], [0], [0], [1], [0, 0, 1, 1], [], []>} : vector<20x60xf32>, vector<60x240xf32>, vector<20x240xf32> -> vector<20x240xf32>
    %6 = vector.broadcast %0 : vector<1x240xf32> to vector<20x240xf32>
    %7 = arith.addf %6, %5 : vector<20x240xf32>
    %c0_7 = arith.constant 0 : index
    %c0_8 = arith.constant 0 : index
    %c0_9 = arith.constant 0 : index
    %8 = vector.load %arg2[%c0_7, %c0_8, %c0_9] : memref<1x20x60xf32, #tpu.memory_space<vmem>>, vector<1x20x60xf32>
    %9 = vector.shape_cast %8 : vector<1x20x60xf32> to vector<20x60xf32>
    %c1 = arith.constant 1 : index
    %c0_10 = arith.constant 0 : index
    %c0_11 = arith.constant 0 : index
    %10 = vector.load %arg4[%c1, %c0_10, %c0_11] : memref<3x60x240xf32, #tpu.memory_space<vmem>>, vector<1x60x240xf32>
    %11 = vector.shape_cast %10 : vector<1x60x240xf32> to vector<60x240xf32>
    %cst_12 = arith.constant dense<0.000000e+00> : vector<20x240xf32>
    %12 = tpu.matmul %9, %11, %cst_12 {dimension_numbers = #tpu.dot_dimension_numbers<[1], [0], [0], [1], [0, 0, 1, 1], [], []>} : vector<20x60xf32>, vector<60x240xf32>, vector<20x240xf32> -> vector<20x240xf32>
    %13 = arith.addf %7, %12 : vector<20x240xf32>
    %c0_13 = arith.constant 0 : index
    %c0_14 = arith.constant 0 : index
    %c0_15 = arith.constant 0 : index
    %14 = vector.load %arg3[%c0_13, %c0_14, %c0_15] : memref<1x20x60xf32, #tpu.memory_space<vmem>>, vector<1x20x60xf32>
    %15 = vector.shape_cast %14 : vector<1x20x60xf32> to vector<20x60xf32>
    %c2 = arith.constant 2 : index
    %c0_16 = arith.constant 0 : index
    %c0_17 = arith.constant 0 : index
    %16 = vector.load %arg4[%c2, %c0_16, %c0_17] : memref<3x60x240xf32, #tpu.memory_space<vmem>>, vector<1x60x240xf32>
    %17 = vector.shape_cast %16 : vector<1x60x240xf32> to vector<60x240xf32>
    %cst_18 = arith.constant dense<0.000000e+00> : vector<20x240xf32>
    %18 = tpu.matmul %15, %17, %cst_18 {dimension_numbers = #tpu.dot_dimension_numbers<[1], [0], [0], [1], [0, 0, 1, 1], [], []>} : vector<20x60xf32>, vector<60x240xf32>, vector<20x240xf32> -> vector<20x240xf32>
    %19 = arith.addf %13, %18 : vector<20x240xf32>
    %cst_19 = arith.constant 0.000000e+00 : f32
    %20 = vector.broadcast %cst_19 : f32 to vector<20x240xf32>
    %21 = arith.maximumf %19, %20 : vector<20x240xf32>
    %22 = vector.extract_strided_slice %21 {offsets = [0, 0], sizes = [20, 48], strides = [1, 1]} : vector<20x240xf32> to vector<20x48xf32>
    %cst_20 = arith.constant 0.000000e+00 : f32
    %23 = vector.broadcast %cst_20 : f32 to vector<20x48xf32>
    %24 = vector.extract_strided_slice %21 {offsets = [0, 48], sizes = [20, 48], strides = [1, 1]} : vector<20x240xf32> to vector<20x48xf32>
    %25 = arith.cmpf ogt, %24, %22 : vector<20x48xf32>
    %26 = arith.select %25, %24, %22 : vector<20x48xi1>, vector<20x48xf32>
    %cst_21 = arith.constant 1.000000e+00 : f32
    %27 = vector.broadcast %cst_21 : f32 to vector<20x48xf32>
    %28 = arith.select %25, %27, %23 : vector<20x48xi1>, vector<20x48xf32>
    %29 = vector.extract_strided_slice %21 {offsets = [0, 96], sizes = [20, 48], strides = [1, 1]} : vector<20x240xf32> to vector<20x48xf32>
    %30 = arith.cmpf ogt, %29, %26 : vector<20x48xf32>
    %31 = arith.select %30, %29, %26 : vector<20x48xi1>, vector<20x48xf32>
    %cst_22 = arith.constant 2.000000e+00 : f32
    %32 = vector.broadcast %cst_22 : f32 to vector<20x48xf32>
    %33 = arith.select %30, %32, %28 : vector<20x48xi1>, vector<20x48xf32>
    %34 = vector.extract_strided_slice %21 {offsets = [0, 144], sizes = [20, 48], strides = [1, 1]} : vector<20x240xf32> to vector<20x48xf32>
    %35 = arith.cmpf ogt, %34, %31 : vector<20x48xf32>
    %36 = arith.select %35, %34, %31 : vector<20x48xi1>, vector<20x48xf32>
    %cst_23 = arith.constant 3.000000e+00 : f32
    %37 = vector.broadcast %cst_23 : f32 to vector<20x48xf32>
    %38 = arith.select %35, %37, %33 : vector<20x48xi1>, vector<20x48xf32>
    %39 = vector.extract_strided_slice %21 {offsets = [0, 192], sizes = [20, 48], strides = [1, 1]} : vector<20x240xf32> to vector<20x48xf32>
    %40 = arith.cmpf ogt, %39, %36 : vector<20x48xf32>
    %41 = arith.select %40, %39, %36 : vector<20x48xi1>, vector<20x48xf32>
    %cst_24 = arith.constant 4.000000e+00 : f32
    %42 = vector.broadcast %cst_24 : f32 to vector<20x48xf32>
    %43 = arith.select %40, %42, %38 : vector<20x48xi1>, vector<20x48xf32>
    %44 = vector.extract_strided_slice %41 {offsets = [0, 0], sizes = [4, 48], strides = [1, 1]} : vector<20x48xf32> to vector<4x48xf32>
    %45 = vector.extract_strided_slice %43 {offsets = [0, 0], sizes = [4, 48], strides = [1, 1]} : vector<20x48xf32> to vector<4x48xf32>
    %cst_25 = arith.constant 0.000000e+00 : f32
    %46 = vector.broadcast %cst_25 : f32 to vector<4x48xf32>
    %47 = vector.extract_strided_slice %41 {offsets = [4, 0], sizes = [4, 48], strides = [1, 1]} : vector<20x48xf32> to vector<4x48xf32>
    %48 = vector.extract_strided_slice %43 {offsets = [4, 0], sizes = [4, 48], strides = [1, 1]} : vector<20x48xf32> to vector<4x48xf32>
    %49 = arith.cmpf ogt, %47, %44 : vector<4x48xf32>
    %50 = arith.select %49, %47, %44 : vector<4x48xi1>, vector<4x48xf32>
    %51 = arith.select %49, %48, %45 : vector<4x48xi1>, vector<4x48xf32>
    %cst_26 = arith.constant 1.000000e+00 : f32
    %52 = vector.broadcast %cst_26 : f32 to vector<4x48xf32>
    %53 = arith.select %49, %52, %46 : vector<4x48xi1>, vector<4x48xf32>
    %54 = vector.extract_strided_slice %41 {offsets = [8, 0], sizes = [4, 48], strides = [1, 1]} : vector<20x48xf32> to vector<4x48xf32>
    %55 = vector.extract_strided_slice %43 {offsets = [8, 0], sizes = [4, 48], strides = [1, 1]} : vector<20x48xf32> to vector<4x48xf32>
    %56 = arith.cmpf ogt, %54, %50 : vector<4x48xf32>
    %57 = arith.select %56, %54, %50 : vector<4x48xi1>, vector<4x48xf32>
    %58 = arith.select %56, %55, %51 : vector<4x48xi1>, vector<4x48xf32>
    %cst_27 = arith.constant 2.000000e+00 : f32
    %59 = vector.broadcast %cst_27 : f32 to vector<4x48xf32>
    %60 = arith.select %56, %59, %53 : vector<4x48xi1>, vector<4x48xf32>
    %61 = vector.extract_strided_slice %41 {offsets = [12, 0], sizes = [4, 48], strides = [1, 1]} : vector<20x48xf32> to vector<4x48xf32>
    %62 = vector.extract_strided_slice %43 {offsets = [12, 0], sizes = [4, 48], strides = [1, 1]} : vector<20x48xf32> to vector<4x48xf32>
    %63 = arith.cmpf ogt, %61, %57 : vector<4x48xf32>
    %64 = arith.select %63, %61, %57 : vector<4x48xi1>, vector<4x48xf32>
    %65 = arith.select %63, %62, %58 : vector<4x48xi1>, vector<4x48xf32>
    %cst_28 = arith.constant 3.000000e+00 : f32
    %66 = vector.broadcast %cst_28 : f32 to vector<4x48xf32>
    %67 = arith.select %63, %66, %60 : vector<4x48xi1>, vector<4x48xf32>
    %68 = vector.extract_strided_slice %41 {offsets = [16, 0], sizes = [4, 48], strides = [1, 1]} : vector<20x48xf32> to vector<4x48xf32>
    %69 = vector.extract_strided_slice %43 {offsets = [16, 0], sizes = [4, 48], strides = [1, 1]} : vector<20x48xf32> to vector<4x48xf32>
    %70 = arith.cmpf ogt, %68, %64 : vector<4x48xf32>
    %71 = arith.select %70, %68, %64 : vector<4x48xi1>, vector<4x48xf32>
    %72 = arith.select %70, %69, %65 : vector<4x48xi1>, vector<4x48xf32>
    %cst_29 = arith.constant 4.000000e+00 : f32
    %73 = vector.broadcast %cst_29 : f32 to vector<4x48xf32>
    %74 = arith.select %70, %73, %67 : vector<4x48xi1>, vector<4x48xf32>
    %cst_30 = arith.constant 5.000000e+00 : f32
    %75 = vector.broadcast %cst_30 : f32 to vector<4x48xf32>
    %76 = arith.mulf %74, %75 : vector<4x48xf32>
    %77 = arith.addf %76, %72 : vector<4x48xf32>
    %78 = vector.extract_strided_slice %71 {offsets = [0, 0], sizes = [1, 48], strides = [1, 1]} : vector<4x48xf32> to vector<1x48xf32>
    %79 = vector.extract_strided_slice %71 {offsets = [1, 0], sizes = [1, 48], strides = [1, 1]} : vector<4x48xf32> to vector<1x48xf32>
    %80 = vector.extract_strided_slice %71 {offsets = [2, 0], sizes = [1, 48], strides = [1, 1]} : vector<4x48xf32> to vector<1x48xf32>
    %81 = vector.extract_strided_slice %71 {offsets = [3, 0], sizes = [1, 48], strides = [1, 1]} : vector<4x48xf32> to vector<1x48xf32>
    %82 = tpu.concatenate %78, %79, %80, %81 in 1 : vector<1x48xf32>, vector<1x48xf32>, vector<1x48xf32>, vector<1x48xf32> -> vector<1x192xf32>
    %c0_31 = arith.constant 0 : index
    %c0_32 = arith.constant 0 : index
    %83 = vector.load %arg6[%c0_31, %c0_32] : memref<192x384xf32, #tpu.memory_space<vmem>>, vector<192x384xf32>
    %cst_33 = arith.constant dense<0.000000e+00> : vector<1x384xf32>
    %84 = tpu.matmul %82, %83, %cst_33 {dimension_numbers = #tpu.dot_dimension_numbers<[1], [0], [0], [1], [0, 0, 1, 1], [], []>} : vector<1x192xf32>, vector<192x384xf32>, vector<1x384xf32> -> vector<1x384xf32>
    %c0_34 = arith.constant 0 : index
    %c0_35 = arith.constant 0 : index
    %85 = vector.load %arg7[%c0_34, %c0_35] : memref<1x384xf32, #tpu.memory_space<vmem>>, vector<1x384xf32>
    %86 = arith.addf %84, %85 : vector<1x384xf32>
    %cst_36 = arith.constant 0.000000e+00 : f32
    %87 = vector.broadcast %cst_36 : f32 to vector<1x384xf32>
    %88 = arith.maximumf %86, %87 : vector<1x384xf32>
    %89 = vector.extract_strided_slice %88 {offsets = [0, 0], sizes = [1, 96], strides = [1, 1]} : vector<1x384xf32> to vector<1x96xf32>
    %cst_37 = arith.constant 0.000000e+00 : f32
    %90 = vector.broadcast %cst_37 : f32 to vector<1x96xf32>
    %91 = vector.extract_strided_slice %88 {offsets = [0, 96], sizes = [1, 96], strides = [1, 1]} : vector<1x384xf32> to vector<1x96xf32>
    %92 = arith.cmpf ogt, %91, %89 : vector<1x96xf32>
    %93 = arith.select %92, %91, %89 : vector<1x96xi1>, vector<1x96xf32>
    %cst_38 = arith.constant 1.000000e+00 : f32
    %94 = vector.broadcast %cst_38 : f32 to vector<1x96xf32>
    %95 = arith.select %92, %94, %90 : vector<1x96xi1>, vector<1x96xf32>
    %96 = vector.extract_strided_slice %88 {offsets = [0, 192], sizes = [1, 96], strides = [1, 1]} : vector<1x384xf32> to vector<1x96xf32>
    %97 = arith.cmpf ogt, %96, %93 : vector<1x96xf32>
    %98 = arith.select %97, %96, %93 : vector<1x96xi1>, vector<1x96xf32>
    %cst_39 = arith.constant 2.000000e+00 : f32
    %99 = vector.broadcast %cst_39 : f32 to vector<1x96xf32>
    %100 = arith.select %97, %99, %95 : vector<1x96xi1>, vector<1x96xf32>
    %101 = vector.extract_strided_slice %88 {offsets = [0, 288], sizes = [1, 96], strides = [1, 1]} : vector<1x384xf32> to vector<1x96xf32>
    %102 = arith.cmpf ogt, %101, %98 : vector<1x96xf32>
    %103 = arith.select %102, %101, %98 : vector<1x96xi1>, vector<1x96xf32>
    %cst_40 = arith.constant 3.000000e+00 : f32
    %104 = vector.broadcast %cst_40 : f32 to vector<1x96xf32>
    %105 = arith.select %102, %104, %100 : vector<1x96xi1>, vector<1x96xf32>
    %c0_41 = arith.constant 0 : index
    %c0_42 = arith.constant 0 : index
    %106 = vector.load %arg8[%c0_41, %c0_42] : memref<96x144xf32, #tpu.memory_space<vmem>>, vector<96x144xf32>
    %cst_43 = arith.constant dense<0.000000e+00> : vector<1x144xf32>
    %107 = tpu.matmul %103, %106, %cst_43 {dimension_numbers = #tpu.dot_dimension_numbers<[1], [0], [0], [1], [0, 0, 1, 1], [], []>} : vector<1x96xf32>, vector<96x144xf32>, vector<1x144xf32> -> vector<1x144xf32>
    %c0_44 = arith.constant 0 : index
    %c0_45 = arith.constant 0 : index
    %108 = vector.load %arg9[%c0_44, %c0_45] : memref<1x144xf32, #tpu.memory_space<vmem>>, vector<1x144xf32>
    %109 = arith.addf %107, %108 : vector<1x144xf32>
    %cst_46 = arith.constant 0.000000e+00 : f32
    %110 = vector.broadcast %cst_46 : f32 to vector<1x144xf32>
    %111 = arith.maximumf %109, %110 : vector<1x144xf32>
    %c0_47 = arith.constant 0 : index
    %c0_48 = arith.constant 0 : index
    %112 = vector.load %arg10[%c0_47, %c0_48] : memref<144x48xf32, #tpu.memory_space<vmem>>, vector<144x48xf32>
    %cst_49 = arith.constant dense<0.000000e+00> : vector<1x48xf32>
    %113 = tpu.matmul %111, %112, %cst_49 {dimension_numbers = #tpu.dot_dimension_numbers<[1], [0], [0], [1], [0, 0, 1, 1], [], []>} : vector<1x144xf32>, vector<144x48xf32>, vector<1x48xf32> -> vector<1x48xf32>
    %c0_50 = arith.constant 0 : index
    %c0_51 = arith.constant 0 : index
    %114 = vector.load %arg11[%c0_50, %c0_51] : memref<1x48xf32, #tpu.memory_space<vmem>>, vector<1x48xf32>
    %115 = arith.addf %113, %114 : vector<1x48xf32>
    %cst_52 = arith.constant 0.000000e+00 : f32
    %116 = vector.broadcast %cst_52 : f32 to vector<1x48xf32>
    %117 = arith.maximumf %115, %116 : vector<1x48xf32>
    %c0_53 = arith.constant 0 : index
    %c0_54 = arith.constant 0 : index
    %118 = vector.load %arg12[%c0_53, %c0_54] : memref<48x144xf32, #tpu.memory_space<vmem>>, vector<48x144xf32>
    %cst_55 = arith.constant dense<0.000000e+00> : vector<1x144xf32>
    %119 = tpu.matmul %117, %118, %cst_55 {dimension_numbers = #tpu.dot_dimension_numbers<[1], [0], [0], [1], [0, 0, 1, 1], [], []>} : vector<1x48xf32>, vector<48x144xf32>, vector<1x144xf32> -> vector<1x144xf32>
    %c0_56 = arith.constant 0 : index
    %c0_57 = arith.constant 0 : index
    %120 = vector.load %arg13[%c0_56, %c0_57] : memref<1x144xf32, #tpu.memory_space<vmem>>, vector<1x144xf32>
    %121 = arith.addf %119, %120 : vector<1x144xf32>
    %cst_58 = arith.constant 0.000000e+00 : f32
    %122 = vector.broadcast %cst_58 : f32 to vector<1x144xf32>
    %123 = arith.maximumf %121, %122 : vector<1x144xf32>
    %c0_59 = arith.constant 0 : index
    %c0_60 = arith.constant 0 : index
    %124 = vector.load %arg14[%c0_59, %c0_60] : memref<144x96xf32, #tpu.memory_space<vmem>>, vector<144x96xf32>
    %cst_61 = arith.constant dense<0.000000e+00> : vector<1x96xf32>
    %125 = tpu.matmul %123, %124, %cst_61 {dimension_numbers = #tpu.dot_dimension_numbers<[1], [0], [0], [1], [0, 0, 1, 1], [], []>} : vector<1x144xf32>, vector<144x96xf32>, vector<1x96xf32> -> vector<1x96xf32>
    %c0_62 = arith.constant 0 : index
    %c0_63 = arith.constant 0 : index
    %126 = vector.load %arg15[%c0_62, %c0_63] : memref<1x96xf32, #tpu.memory_space<vmem>>, vector<1x96xf32>
    %127 = arith.addf %125, %126 : vector<1x96xf32>
    %c0_64 = arith.constant 0 : index
    %c0_65 = arith.constant 0 : index
    %128 = vector.load %arg16[%c0_64, %c0_65] : memref<96x384xf32, #tpu.memory_space<vmem>>, vector<96x384xf32>
    %cst_66 = arith.constant dense<0.000000e+00> : vector<1x384xf32>
    %129 = tpu.matmul %127, %128, %cst_66 {dimension_numbers = #tpu.dot_dimension_numbers<[1], [0], [0], [1], [0, 0, 1, 1], [], []>} : vector<1x96xf32>, vector<96x384xf32>, vector<1x384xf32> -> vector<1x384xf32>
    %c0_67 = arith.constant 0 : index
    %c0_68 = arith.constant 0 : index
    %130 = vector.load %arg16[%c0_67, %c0_68] : memref<96x384xf32, #tpu.memory_space<vmem>>, vector<96x384xf32>
    %cst_69 = arith.constant dense<0.000000e+00> : vector<1x384xf32>
    %131 = tpu.matmul %105, %130, %cst_69 {dimension_numbers = #tpu.dot_dimension_numbers<[1], [0], [0], [1], [0, 0, 1, 1], [], []>} : vector<1x96xf32>, vector<96x384xf32>, vector<1x384xf32> -> vector<1x384xf32>
    %c0_70 = arith.constant 0 : index
    %c0_71 = arith.constant 0 : index
    %132 = vector.load %arg17[%c0_70, %c0_71] : memref<1x384xf32, #tpu.memory_space<vmem>>, vector<1x384xf32>
    %133 = arith.cmpf oeq, %131, %132 : vector<1x384xf32>
    %cst_72 = arith.constant 0.000000e+00 : f32
    %134 = vector.broadcast %cst_72 : f32 to vector<1x384xf32>
    %135 = arith.select %133, %129, %134 : vector<1x384xi1>, vector<1x384xf32>
    %c0_73 = arith.constant 0 : index
    %c0_74 = arith.constant 0 : index
    %136 = vector.load %arg18[%c0_73, %c0_74] : memref<384x192xf32, #tpu.memory_space<vmem>>, vector<384x192xf32>
    %cst_75 = arith.constant dense<0.000000e+00> : vector<1x192xf32>
    %137 = tpu.matmul %135, %136, %cst_75 {dimension_numbers = #tpu.dot_dimension_numbers<[1], [0], [0], [1], [0, 0, 1, 1], [], []>} : vector<1x384xf32>, vector<384x192xf32>, vector<1x192xf32> -> vector<1x192xf32>
    %c0_76 = arith.constant 0 : index
    %c0_77 = arith.constant 0 : index
    %138 = vector.load %arg19[%c0_76, %c0_77] : memref<1x192xf32, #tpu.memory_space<vmem>>, vector<1x192xf32>
    %139 = arith.addf %137, %138 : vector<1x192xf32>
    %cst_78 = arith.constant 0.000000e+00 : f32
    %140 = vector.broadcast %cst_78 : f32 to vector<1x192xf32>
    %141 = arith.maximumf %139, %140 : vector<1x192xf32>
    %142 = vector.extract_strided_slice %141 {offsets = [0, 0], sizes = [1, 48], strides = [1, 1]} : vector<1x192xf32> to vector<1x48xf32>
    %143 = vector.extract_strided_slice %141 {offsets = [0, 48], sizes = [1, 48], strides = [1, 1]} : vector<1x192xf32> to vector<1x48xf32>
    %144 = vector.extract_strided_slice %141 {offsets = [0, 96], sizes = [1, 48], strides = [1, 1]} : vector<1x192xf32> to vector<1x48xf32>
    %145 = vector.extract_strided_slice %141 {offsets = [0, 144], sizes = [1, 48], strides = [1, 1]} : vector<1x192xf32> to vector<1x48xf32>
    %146 = tpu.concatenate %142, %143, %144, %145 in 0 : vector<1x48xf32>, vector<1x48xf32>, vector<1x48xf32>, vector<1x48xf32> -> vector<4x48xf32>
    %c0_79 = arith.constant 0 : index
    %c0_80 = arith.constant 0 : index
    %147 = vector.load %arg20[%c0_79, %c0_80] : memref<48x240xf32, #tpu.memory_space<vmem>>, vector<48x240xf32>
    %cst_81 = arith.constant dense<0.000000e+00> : vector<4x240xf32>
    %148 = tpu.matmul %77, %147, %cst_81 {dimension_numbers = #tpu.dot_dimension_numbers<[1], [0], [0], [1], [0, 0, 1, 1], [], []>} : vector<4x48xf32>, vector<48x240xf32>, vector<4x240xf32> -> vector<4x240xf32>
    %c0_82 = arith.constant 0 : index
    %c0_83 = arith.constant 0 : index
    %149 = vector.load %arg20[%c0_82, %c0_83] : memref<48x240xf32, #tpu.memory_space<vmem>>, vector<48x240xf32>
    %cst_84 = arith.constant dense<0.000000e+00> : vector<4x240xf32>
    %150 = tpu.matmul %146, %149, %cst_84 {dimension_numbers = #tpu.dot_dimension_numbers<[1], [0], [0], [1], [0, 0, 1, 1], [], []>} : vector<4x48xf32>, vector<48x240xf32>, vector<4x240xf32> -> vector<4x240xf32>
    %c0_85 = arith.constant 0 : index
    %c0_86 = arith.constant 0 : index
    %151 = vector.load %arg21[%c0_85, %c0_86] : memref<5x240xf32, #tpu.memory_space<vmem>>, vector<1x240xf32>
    %152 = vector.broadcast %151 : vector<1x240xf32> to vector<4x240xf32>
    %153 = arith.cmpf oeq, %148, %152 : vector<4x240xf32>
    %cst_87 = arith.constant 0.000000e+00 : f32
    %154 = vector.broadcast %cst_87 : f32 to vector<4x240xf32>
    %155 = arith.select %153, %150, %154 : vector<4x240xi1>, vector<4x240xf32>
    %c1_88 = arith.constant 1 : index
    %c0_89 = arith.constant 0 : index
    %156 = vector.load %arg21[%c1_88, %c0_89] : memref<5x240xf32, #tpu.memory_space<vmem>>, vector<1x240xf32>
    %157 = vector.broadcast %156 : vector<1x240xf32> to vector<4x240xf32>
    %158 = arith.cmpf oeq, %148, %157 : vector<4x240xf32>
    %cst_90 = arith.constant 0.000000e+00 : f32
    %159 = vector.broadcast %cst_90 : f32 to vector<4x240xf32>
    %160 = arith.select %158, %150, %159 : vector<4x240xi1>, vector<4x240xf32>
    %c2_91 = arith.constant 2 : index
    %c0_92 = arith.constant 0 : index
    %161 = vector.load %arg21[%c2_91, %c0_92] : memref<5x240xf32, #tpu.memory_space<vmem>>, vector<1x240xf32>
    %162 = vector.broadcast %161 : vector<1x240xf32> to vector<4x240xf32>
    %163 = arith.cmpf oeq, %148, %162 : vector<4x240xf32>
    %cst_93 = arith.constant 0.000000e+00 : f32
    %164 = vector.broadcast %cst_93 : f32 to vector<4x240xf32>
    %165 = arith.select %163, %150, %164 : vector<4x240xi1>, vector<4x240xf32>
    %c3 = arith.constant 3 : index
    %c0_94 = arith.constant 0 : index
    %166 = vector.load %arg21[%c3, %c0_94] : memref<5x240xf32, #tpu.memory_space<vmem>>, vector<1x240xf32>
    %167 = vector.broadcast %166 : vector<1x240xf32> to vector<4x240xf32>
    %168 = arith.cmpf oeq, %148, %167 : vector<4x240xf32>
    %cst_95 = arith.constant 0.000000e+00 : f32
    %169 = vector.broadcast %cst_95 : f32 to vector<4x240xf32>
    %170 = arith.select %168, %150, %169 : vector<4x240xi1>, vector<4x240xf32>
    %c4 = arith.constant 4 : index
    %c0_96 = arith.constant 0 : index
    %171 = vector.load %arg21[%c4, %c0_96] : memref<5x240xf32, #tpu.memory_space<vmem>>, vector<1x240xf32>
    %172 = vector.broadcast %171 : vector<1x240xf32> to vector<4x240xf32>
    %173 = arith.cmpf oeq, %148, %172 : vector<4x240xf32>
    %cst_97 = arith.constant 0.000000e+00 : f32
    %174 = vector.broadcast %cst_97 : f32 to vector<4x240xf32>
    %175 = arith.select %173, %150, %174 : vector<4x240xi1>, vector<4x240xf32>
    %176 = tpu.concatenate %155, %160, %165, %170, %175 in 0 : vector<4x240xf32>, vector<4x240xf32>, vector<4x240xf32>, vector<4x240xf32>, vector<4x240xf32> -> vector<20x240xf32>
    %c0_98 = arith.constant 0 : index
    %c0_99 = arith.constant 0 : index
    %177 = vector.load %arg22[%c0_98, %c0_99] : memref<240x128xf32, #tpu.memory_space<vmem>>, vector<240x128xf32>
    %cst_100 = arith.constant dense<0.000000e+00> : vector<20x128xf32>
    %178 = tpu.matmul %176, %177, %cst_100 {dimension_numbers = #tpu.dot_dimension_numbers<[1], [0], [0], [1], [0, 0, 1, 1], [], []>} : vector<20x240xf32>, vector<240x128xf32>, vector<20x128xf32> -> vector<20x128xf32>
    %c0_101 = arith.constant 0 : index
    %c0_102 = arith.constant 0 : index
    %179 = vector.load %arg23[%c0_101, %c0_102] : memref<1x128xf32, #tpu.memory_space<vmem>>, vector<1x128xf32>
    %180 = vector.broadcast %179 : vector<1x128xf32> to vector<20x128xf32>
    %181 = arith.addf %178, %180 : vector<20x128xf32>
    %cst_103 = arith.constant 5.000000e-01 : f32
    %182 = vector.broadcast %cst_103 : f32 to vector<20x128xf32>
    %183 = arith.mulf %182, %181 : vector<20x128xf32>
    %184 = math.tanh %183 : vector<20x128xf32>
    %cst_104 = arith.constant 1.000000e+00 : f32
    %185 = vector.broadcast %cst_104 : f32 to vector<20x128xf32>
    %186 = arith.addf %184, %185 : vector<20x128xf32>
    %cst_105 = arith.constant 5.000000e-01 : f32
    %187 = vector.broadcast %cst_105 : f32 to vector<20x128xf32>
    %188 = arith.mulf %187, %186 : vector<20x128xf32>
    %c0_106 = arith.constant 0 : index
    %c0_107 = arith.constant 0 : index
    %c0_108 = arith.constant 0 : index
    %189 = vector.load %arg24[%c0_106, %c0_107, %c0_108] : memref<1x20x128xf32, #tpu.memory_space<vmem>>, vector<1x20x128xf32>
    %190 = vector.shape_cast %189 : vector<1x20x128xf32> to vector<20x128xf32>
    %191 = vector.shape_cast %188 : vector<20x128xf32> to vector<1x20x128xf32>
    tpu.vector_store %arg24[%c0_106, %c0_107, %c0_108], %191 {strides = array<i32>} : memref<1x20x128xf32, #tpu.memory_space<vmem>>, vector<1x20x128xf32>,
    return
  }
  func.func @transform_0(%arg0: i32) -> (i32, i32, i32) {
    %c0_i32 = arith.constant 0 : i32
    %c0_i32_0 = arith.constant 0 : i32
    %c0_i32_1 = arith.constant 0 : i32
    return %arg0, %c0_i32, %c0_i32_0 : i32, i32, i32
  }
  func.func @transform_1(%arg0: i32) -> (i32, i32, i32) {
    %c0_i32 = arith.constant 0 : i32
    %c0_i32_0 = arith.constant 0 : i32
    %c0_i32_1 = arith.constant 0 : i32
    return %arg0, %c0_i32, %c0_i32_0 : i32, i32, i32
  }
  func.func @transform_2(%arg0: i32) -> (i32, i32, i32) {
    %c0_i32 = arith.constant 0 : i32
    %c0_i32_0 = arith.constant 0 : i32
    %c0_i32_1 = arith.constant 0 : i32
    return %arg0, %c0_i32, %c0_i32_0 : i32, i32, i32
  }
  func.func @transform_3(%arg0: i32) -> (i32, i32, i32) {
    %c0_i32 = arith.constant 0 : i32
    %c0_i32_0 = arith.constant 0 : i32
    %c0_i32_1 = arith.constant 0 : i32
    %c0_i32_2 = arith.constant 0 : i32
    return %c0_i32, %c0_i32_0, %c0_i32_1 : i32, i32, i32
  }
  func.func @transform_4(%arg0: i32) -> (i32, i32) {
    %c0_i32 = arith.constant 0 : i32
    %c0_i32_0 = arith.constant 0 : i32
    %c0_i32_1 = arith.constant 0 : i32
    return %c0_i32, %c0_i32_0 : i32, i32
  }
  func.func @transform_5(%arg0: i32) -> (i32, i32) {
    %c0_i32 = arith.constant 0 : i32
    %c0_i32_0 = arith.constant 0 : i32
    %c0_i32_1 = arith.constant 0 : i32
    return %c0_i32, %c0_i32_0 : i32, i32
  }
  func.func @transform_6(%arg0: i32) -> (i32, i32) {
    %c0_i32 = arith.constant 0 : i32
    %c0_i32_0 = arith.constant 0 : i32
    %c0_i32_1 = arith.constant 0 : i32
    return %c0_i32, %c0_i32_0 : i32, i32
  }
  func.func @transform_7(%arg0: i32) -> (i32, i32) {
    %c0_i32 = arith.constant 0 : i32
    %c0_i32_0 = arith.constant 0 : i32
    %c0_i32_1 = arith.constant 0 : i32
    return %c0_i32, %c0_i32_0 : i32, i32
  }
  func.func @transform_8(%arg0: i32) -> (i32, i32) {
    %c0_i32 = arith.constant 0 : i32
    %c0_i32_0 = arith.constant 0 : i32
    %c0_i32_1 = arith.constant 0 : i32
    return %c0_i32, %c0_i32_0 : i32, i32
  }
  func.func @transform_9(%arg0: i32) -> (i32, i32) {
    %c0_i32 = arith.constant 0 : i32
    %c0_i32_0 = arith.constant 0 : i32
    %c0_i32_1 = arith.constant 0 : i32
    return %c0_i32, %c0_i32_0 : i32, i32
  }
  func.func @transform_10(%arg0: i32) -> (i32, i32) {
    %c0_i32 = arith.constant 0 : i32
    %c0_i32_0 = arith.constant 0 : i32
    %c0_i32_1 = arith.constant 0 : i32
    return %c0_i32, %c0_i32_0 : i32, i32
  }
  func.func @transform_11(%arg0: i32) -> (i32, i32) {
    %c0_i32 = arith.constant 0 : i32
    %c0_i32_0 = arith.constant 0 : i32
    %c0_i32_1 = arith.constant 0 : i32
    return %c0_i32, %c0_i32_0 : i32, i32
  }
  func.func @transform_12(%arg0: i32) -> (i32, i32) {
    %c0_i32 = arith.constant 0 : i32
    %c0_i32_0 = arith.constant 0 : i32
    %c0_i32_1 = arith.constant 0 : i32
    return %c0_i32, %c0_i32_0 : i32, i32
  }
  func.func @transform_13(%arg0: i32) -> (i32, i32) {
    %c0_i32 = arith.constant 0 : i32
    %c0_i32_0 = arith.constant 0 : i32
    %c0_i32_1 = arith.constant 0 : i32
    return %c0_i32, %c0_i32_0 : i32, i32
  }
  func.func @transform_14(%arg0: i32) -> (i32, i32) {
    %c0_i32 = arith.constant 0 : i32
    %c0_i32_0 = arith.constant 0 : i32
    %c0_i32_1 = arith.constant 0 : i32
    return %c0_i32, %c0_i32_0 : i32, i32
  }
  func.func @transform_15(%arg0: i32) -> (i32, i32) {
    %c0_i32 = arith.constant 0 : i32
    %c0_i32_0 = arith.constant 0 : i32
    %c0_i32_1 = arith.constant 0 : i32
    return %c0_i32, %c0_i32_0 : i32, i32
  }
  func.func @transform_16(%arg0: i32) -> (i32, i32) {
    %c0_i32 = arith.constant 0 : i32
    %c0_i32_0 = arith.constant 0 : i32
    %c0_i32_1 = arith.constant 0 : i32
    return %c0_i32, %c0_i32_0 : i32, i32
  }
  func.func @transform_17(%arg0: i32) -> (i32, i32) {
    %c0_i32 = arith.constant 0 : i32
    %c0_i32_0 = arith.constant 0 : i32
    %c0_i32_1 = arith.constant 0 : i32
    return %c0_i32, %c0_i32_0 : i32, i32
  }
  func.func @transform_18(%arg0: i32) -> (i32, i32) {
    %c0_i32 = arith.constant 0 : i32
    %c0_i32_0 = arith.constant 0 : i32
    %c0_i32_1 = arith.constant 0 : i32
    return %c0_i32, %c0_i32_0 : i32, i32
  }
  func.func @transform_19(%arg0: i32) -> (i32, i32) {
    %c0_i32 = arith.constant 0 : i32
    %c0_i32_0 = arith.constant 0 : i32
    %c0_i32_1 = arith.constant 0 : i32
    return %c0_i32, %c0_i32_0 : i32, i32
  }
  func.func @transform_20(%arg0: i32) -> (i32, i32) {
    %c0_i32 = arith.constant 0 : i32
    %c0_i32_0 = arith.constant 0 : i32
    %c0_i32_1 = arith.constant 0 : i32
    return %c0_i32, %c0_i32_0 : i32, i32
  }
  func.func @transform_21(%arg0: i32) -> (i32, i32) {
    %c0_i32 = arith.constant 0 : i32
    %c0_i32_0 = arith.constant 0 : i32
    %c0_i32_1 = arith.constant 0 : i32
    return %c0_i32, %c0_i32_0 : i32, i32
  }
  func.func @transform_22(%arg0: i32) -> (i32, i32) {
    %c0_i32 = arith.constant 0 : i32
    %c0_i32_0 = arith.constant 0 : i32
    %c0_i32_1 = arith.constant 0 : i32
    return %c0_i32, %c0_i32_0 : i32, i32
  }
  func.func @transform_23(%arg0: i32) -> (i32, i32, i32) {
    %c0_i32 = arith.constant 0 : i32
    %c0_i32_0 = arith.constant 0 : i32
    %c0_i32_1 = arith.constant 0 : i32
    return %arg0, %c0_i32, %c0_i32_0 : i32, i32, i32
  }
}

</mosaic_0001>

<bundles_post_ra>
// kernel: unpooling_net_forward.1
= control target key start
LH: loop header
LB: loop body
LE: loop exit
PB: predicated region body
PF: predicated region fallthrough
CT: control target
= control target key end

     0   :  { %s5755_s0 = inlined_call_operand.vmem [shape: f32[2,20,60], index: 0, kind: input, shape index: {}]   ;;  %s5756_s1 = inlined_call_operand.vmem [shape: f32[2,20,60], index: 1, kind: input, shape index: {}]   ;;  %s5757_s2 = inlined_call_operand.vmem [shape: f32[2,20,60], index: 2, kind: input, shape index: {}]   ;;  %s5758_s3 = inlined_call_operand.vmem [shape: f32[3,60,240], index: 3, kind: input, shape index: {}]   ;;  %s5759_s4 = inlined_call_operand.vmem [shape: f32[1,240], index: 4, kind: input, shape index: {}]   ;;  %s5760_s5 = inlined_call_operand.vmem [shape: f32[192,384], index: 5, kind: input, shape index: {}]   ;;  %s5761_s6 = inlined_call_operand.vmem [shape: f32[1,384], index: 6, kind: input, shape index: {}]   ;;  %s5762_s7 = inlined_call_operand.vmem [shape: f32[96,144], index: 7, kind: input, shape index: {}]   ;;  %s5763_s8 = inlined_call_operand.vmem [shape: f32[1,144], index: 8, kind: input, shape index: {}]   ;;  %s5764_s9 = inlined_call_operand.vmem [shape: f32[144,48], index: 9, kind: input, shape index: {}]   ;;  %s5765_s10 = inlined_call_operand.vmem [shape: f32[1,48], index: 10, kind: input, shape index: {}]   ;;  %s5766_s11 = inlined_call_operand.vmem [shape: f32[48,144], index: 11, kind: input, shape index: {}]   ;;  %s5767_s12 = inlined_call_operand.vmem [shape: f32[1,144], index: 12, kind: input, shape index: {}]   ;;  %s5768_s13 = inlined_call_operand.vmem [shape: f32[144,96], index: 13, kind: input, shape index: {}]   ;;  %s5769_s14 = inlined_call_operand.vmem [shape: f32[1,96], index: 14, kind: input, shape index: {}]   ;;  %s5770_s15 = inlined_call_operand.vmem [shape: f32[96,384], index: 15, kind: input, shape index: {}]   ;;  %s5771_s16 = inlined_call_operand.vmem [shape: f32[1,384], index: 16, kind: input, shape index: {}]   ;;  %s5772_s17 = inlined_call_operand.vmem [shape: f32[384,192], index: 17, kind: input, shape index: {}]   ;;  %s5773_s18 = inlined_call_operand.vmem [shape: f32[1,192], index: 18, kind: input, shape index: {}]   ;;  %s5774_s19 = inlined_call_operand.vmem [shape: f32[48,240], index: 19, kind: input, shape index: {}]   ;;  %s5775_s20 = inlined_call_operand.vmem [shape: f32[5,240], index: 20, kind: input, shape index: {}]   ;;  %s5776_s21 = inlined_call_operand.vmem [shape: f32[240,128], index: 21, kind: input, shape index: {}]   ;;  %s5777_s22 = inlined_call_operand.vmem [shape: f32[1,128], index: 22, kind: input, shape index: {}]   ;;  %s5778_s23 = inlined_call_operand.vmem [shape: f32[2,20,128], index: 23, kind: output, shape index: {}]  }
   0x1   :  { %5802 = sst [smem:[#allocation2_spill]] %s5755_s0 }
   0x2   :  { %5803 = sst [smem:[#allocation3_spill]] %s5756_s1 }
   0x3   :  { %5804 = sst [smem:[#allocation4_spill]] %s5757_s2 }
   0x4   :  { %5805 = sst [smem:[#allocation5_spill]] %s5758_s3 }
   0x5   :  { %5806 = sst [smem:[#allocation6_spill]] %s5759_s4  ;;  %s4015_s4 = smov 0  }
   0x6   :  { %5807 = sst [smem:[#allocation7_spill]] %s5760_s5 }
   0x7   :  { %5808 = sst [smem:[#allocation8_spill]] %s5761_s6 }
   0x8   :  { %5809 = sst [smem:[#allocation9_spill]] %s5762_s7 }
   0x9 LB: > { %s3166_s30 = sadd.s32 4294967295, %s3883_s4   ;;  %p3170_p0 = scmp.ge.s32.totalorder %s3883_s4, 1  ;;  %s3883_s4 = sphi %s4015_s4, %s33_s4  }
   0xa   : > { %p657_p1 = scmp.lt.s32.totalorder %s3883_s4, 3 }
   0xc   : > { %p658_p2 = pnand %p3170_p0, %p657_p1 }
   0xd   : > { %s5810_s5 = sld [smem:[#allocation5_spill]] (!%p658_p2)  ;;  %v3885_v7 = vmov (!%p658_p2), 0.0   ;;  %p4042_p3 = scmp.lt.s32.totalorder (!%p658_p2), %s3166_s30, 1  ;;  %vm5782_vm0 = vcmask (!%p658_p2), 1043456   ;;  %vm3886_vm1 = vmmov (!%p658_p2), 1   ;;  %vm771_vm3 = vcmask (!%p658_p2), 490496  }
   0xe   : > { %661 = sbr.rel (%p658_p2) target bundleno = 3503 (0xdaf), region = 112  ;;  %852 = vmatprep.mubr.f32.mxu0 (!%p658_p2), %v3885_v7  ;;  %vm4081_vm2 = vmpackc.low (!%p658_p2), %vm5782_vm0, %vm3886_vm1  ;;  %s5814_s2 = sld [smem:[#allocation2_spill]] (!%p658_p2)  ;;  %vm5801_vm13 = vcmask (!%p658_p2), 392192  }
   0xf   : > { %s5815_s27 = sld [smem:[#allocation3_spill]] (!%p658_p2)  ;;  %s5816_s26 = sld [smem:[#allocation4_spill]] (!%p658_p2) }
  0x10   : > { %s5817_s28 = sld [smem:[#allocation6_spill]] (!%p658_p2)  ;;  %s5796_s24 = smov (!%p658_p2), 48  }
  0x11   : > { %s5818_s25 = sld [smem:[#allocation7_spill]] (!%p658_p2)  ;;  %s5827_s3 = sld [smem:[#allocation8_spill]] (!%p658_p2) }
  0x12   : > { %s5799_s0 = smov (!%p658_p2), 96  }
  0x13   : > { %v756_v0 = vld [vmem:[%s5810_s5 + $0x8] sm:$0xff] (!%p658_p2)  ;;  %v758_v1 = vld [vmem:[%s5810_s5 + $0x18] sm:$0xff] (!%p658_p2)  ;;  %v755_v2 = vld [vmem:[%s5810_s5] sm:$0xff] (!%p658_p2) }
  0x14   : > { %v3328_v3 = vpack.c.bf16 (!%p658_p2), %v758_v1, %v756_v0  ;;  %v757_v4 = vld [vmem:[%s5810_s5 + $0x10] sm:$0xff] (!%p658_p2)  ;;  %v760_v5 = vld [vmem:[%s5810_s5 + $0x28] sm:$0xff] (!%p658_p2)  ;;  %v762_v6 = vld [vmem:[%s5810_s5 + $0x38] sm:$0xff] (!%p658_p2) }
  0x15   : > { %v3330_v8 = vpack.c.bf16 %v757_v4, %v755_v2  ;;  %v3332_v9 = vpack.c.bf16 %v762_v6, %v760_v5  ;;  %v759_v10 = vld [vmem:[%s5810_s5 + $0x20] sm:$0xff]  ;;  %v761_v11 = vld [vmem:[%s5810_s5 + $0x30] sm:$0xff]  ;;  %v764_v12 = vld [vmem:[%s5810_s5 + $0x48] sm:$0xff]  ;;  %s5873_s30 = smov (!%p4042_p3, %s3166_s30), 1 }
  0x16   : > { %3329 = vmatprep.subr.bf16.mxu0 %v3328_v3  ;;  %v766_v13 = vld [vmem:[%s5810_s5 + $0x58] sm:$0xff]  ;;  %v3334_v14 = vpack.c.bf16 %v761_v11, %v759_v10  ;;  %v763_v16 = vld [vmem:[%s5810_s5 + $0x40] sm:$0xff]  ;;  %v765_v17 = vld [vmem:[%s5810_s5 + $0x50] sm:$0xff]  ;;  %s4078_s29 = smul.u32 24, %s5873_s30  ;;  %s5795_s30 = smov 64  }
  0x17   : > { %3331 = vmatpush1.bf16.msra.mxu0 %v3330_v8  ;;  %v3336_v15 = vpack.c.bf16 %v766_v13, %v764_v12  ;;  %v768_v18 = vld [vmem:[%s5810_s5 + $0x68] sm:$0xff]  ;;  %v770_v19 = vld [vmem:[%s5810_s5 + $0x78] sm:$0xf]  ;;  %v3338_v20 = vpack.c.bf16 %v765_v17, %v763_v16  ;;  %v767_v22 = vld [vmem:[%s5810_s5 + $0x60] sm:$0xff] }
  0x18   : > { %3333 = vmatprep.subr.bf16.mxu0 %v3332_v9  ;;  %v3340_v21 = vpack.c.bf16 %v770_v19, %v768_v18  ;;  %v769_v23 = vld [vmem:[%s5810_s5 + $0x70] sm:$0xf]  ;;  %v3181_v25 = vld [vmem:[%s5810_s5 + $0x88] sm:$0xff]  ;;  %v3183_v26 = vld [vmem:[%s5810_s5 + $0x98] sm:$0xff]  ;;  %s735_s6 = scalar_lea.vmem %s5814_s2, %s4078_s29  ;;  %s740_s7 = scalar_lea.vmem %s5815_s27, %s4078_s29 }
  0x19   : > { %v3343_v27 = vpack.c.bf16 %v769_v23, %v767_v22  ;;  %v3346_v28 = vpack.c.bf16 %v3183_v26, %v3181_v25  ;;  %v3180_v29 = vld [vmem:[%s5810_s5 + $0x80] sm:$0xff]  ;;  %v3182_v30 = vld [vmem:[%s5810_s5 + $0x90] sm:$0xff]  ;;  %v3185_v31 = vld [vmem:[%s5810_s5 + $0xa8] sm:$0xff]  ;;  %s5794_s2 = smov 80   ;;  %s5828_s27 = sld [smem:[#allocation9_spill]] }
  0x1a   : > { %v3187_v32 = vld [vmem:[%s5810_s5 + $0xb8] sm:$0xff]  ;;  %v752_v33 = vld [vmem:[%s735_s6] sm:$0xff]  ;;  %v3348_v34 = vpack.c.bf16 %v3182_v30, %v3180_v29  ;;  %v3186_v37 = vld [vmem:[%s5810_s5 + $0xb0] sm:$0xff] }
  0x1b   : > { %3335 = vmatpush1.bf16.msra.mxu0 %v3334_v14  ;;  %v3350_v35 = vpack.c.bf16 %v3187_v32, %v3185_v31  ;;  %v3184_v36 = vld [vmem:[%s5810_s5 + $0xa0] sm:$0xff]  ;;  %v3189_v38 = vld [vmem:[%s5810_s5 + $0xc8] sm:$0xff]  ;;  %v3191_v39 = vld [vmem:[%s5810_s5 + $0xd8] sm:$0xff] }
  0x1c   : > { %3337 = vmatprep.subr.bf16.mxu0 %v3336_v15  ;;  %v3352_v40 = vpack.c.bf16 %v3186_v37, %v3184_v36  ;;  %v753_v41 = vld [vmem:[%s735_s6 + $0x8] sm:$0xff]  ;;  %v3354_v42 = vpack.c.bf16 %v3191_v39, %v3189_v38  ;;  %v3188_v43 = vld [vmem:[%s5810_s5 + $0xc0] sm:$0xff]  ;;  %v3190_v44 = vld [vmem:[%s5810_s5 + $0xd0] sm:$0xff] }
  0x1d   : > { %v3193_v45 = vld [vmem:[%s5810_s5 + $0xe8] sm:$0xff]  ;;  %v3195_v46 = vld [vmem:[%s5810_s5 + $0xf8] sm:$0xf]  ;;  %v3356_v47 = vpack.c.bf16 %v3190_v44, %v3188_v43  ;;  %v754_v48 = vld [vmem:[%s735_s6 + $0x10] sm:$0xf]  ;;  %s745_s6 = scalar_lea.vmem %s5816_s26, %s4078_s29  ;;  %s5791_s26 = smov 112  }
  0x1e   : > { %v3358_v49 = vpack.c.bf16 %v3195_v46, %v3193_v45  ;;  %v3192_v50 = vld [vmem:[%s5810_s5 + $0xe0] sm:$0xff]  ;;  %v3194_v51 = vld [vmem:[%s5810_s5 + $0xf0] sm:$0xf]  ;;  %v3202_v52 = vld [vmem:[%s5810_s5 + $0x108] sm:$0xff] }
  0x1f   : > { %3339 = vmatpush1.bf16.msra.mxu0 %v3338_v20  ;;  %v3204_v53 = vld [vmem:[%s5810_s5 + $0x118] sm:$0xff]  ;;  %v3361_v54 = vpack.c.bf16 %v3194_v51, %v3192_v50  ;;  %v3201_v56 = vld [vmem:[%s5810_s5 + $0x100] sm:$0xff]  ;;  %v3203_v57 = vld [vmem:[%s5810_s5 + $0x110] sm:$0xff]  ;;  %v872_v20 = vlaneseq }
  0x20   : > { %3342 = vmatprep.subr.msk.bf16.mxu0 %vm4081_vm2, %v3340_v21  ;;  %v3364_v55 = vpack.c.bf16 %v3204_v53, %v3202_v52  ;;  %v3206_v58 = vld [vmem:[%s5810_s5 + $0x128] sm:$0xff]  ;;  %v3208_v59 = vld [vmem:[%s5810_s5 + $0x138] sm:$0xff]  ;;  %v888_v60 = vld [vmem:[%s740_s7] sm:$0xff]  ;;  %v3366_v61 = vpack.c.bf16 %v3203_v57, %v3201_v56 }
  0x21   : > { %v3368_v62 = vpack.c.bf16 %v3208_v59, %v3206_v58  ;;  %v3205_v63 = vld [vmem:[%s5810_s5 + $0x120] sm:$0xff]  ;;  %v3207_v0 = vld [vmem:[%s5810_s5 + $0x130] sm:$0xff]  ;;  %v3210_v1 = vld [vmem:[%s5810_s5 + $0x148] sm:$0xff]  ;;  %v4222_v21 = vshrl.u32 %v872_v20, 7 }
  0x22   : > { %v3212_v2 = vld [vmem:[%s5810_s5 + $0x158] sm:$0xff]  ;;  %v3370_v3 = vpack.c.bf16 %v3207_v0, %v3205_v63  ;;  %v889_v4 = vld [vmem:[%s740_s7 + $0x8] sm:$0xff]  ;;  %v3209_v6 = vld [vmem:[%s5810_s5 + $0x140] sm:$0xff] }
  0x23   : > { %3345 = vmatpush1.bf16.msk.msra.mxu0 %vm4081_vm2, %v3343_v27  ;;  %v3372_v5 = vpack.c.bf16 %v3212_v2, %v3210_v1  ;;  %v3211_v8 = vld [vmem:[%s5810_s5 + $0x150] sm:$0xff]  ;;  %v3214_v9 = vld [vmem:[%s5810_s5 + $0x168] sm:$0xff]  ;;  %v3216_v10 = vld [vmem:[%s5810_s5 + $0x178] sm:$0xf]  ;;  %v4225_v22 = vsub.s32 0, %v4222_v21  ;;  %v4274_v43 = vsub.s32 1, %v4222_v21 }
  0x24   : > { %3347 = vmatprep.subr.bf16.mxu0 %v3346_v28  ;;  %v3374_v11 = vpack.c.bf16 %v3211_v8, %v3209_v6  ;;  %v890_v12 = vld [vmem:[%s740_s7 + $0x10] sm:$0xf]  ;;  %v3376_v13 = vpack.c.bf16 %v3216_v10, %v3214_v9  ;;  %v3213_v14 = vld [vmem:[%s5810_s5 + $0x160] sm:$0xff]  ;;  %v1013_v18 = vld [vmem:[%s745_s6 + $0x8] sm:$0xff]  ;;  %s5846_s7 = smov 80  }
  0x25   : > { %v3215_v15 = vld [vmem:[%s5810_s5 + $0x170] sm:$0xf]  ;;  %v1012_v17 = vld [vmem:[%s745_s6] sm:$0xff]  ;;  %v1369_v9 = vld [vmem:[%s5818_s25 + $0x8] sm:$0xff]  ;;  %s5842_s5 = smov 64  }
  0x26   : > { %3177 = vmatmul.mubr.msk.f32.vlgmr.msra.gmra.mrb[0].mxu0 %vm771_vm3, %v752_v33  ;;  %v3379_v16 = vpack.c.bf16 %v3215_v15, %v3213_v14  ;;  %v1014_v19 = vld [vmem:[%s745_s6 + $0x10] sm:$0xf]  ;;  %v751_v23 = vld [vmem:[%s5817_s28] sm:$0x3]  ;;  %v1371_v14 = vld [vmem:[%s5818_s25 + $0x18] sm:$0xff]  ;;  %s5792_s6 = smov 32  }
  0x27   : > { %3349 = vmatpush1.bf16.msra.mxu0 %v3348_v34  ;;  %858 = vmatprep.mubr.f32.mxu0 %v3885_v7  ;;  %v875_v24 = vrot.slane %v751_v23, %v4225_v22  ;;  %v879_v44 = vrot.slane %v751_v23, %v4274_v43  ;;  %v1372_v10 = vld [vmem:[%s5818_s25 + $0x20] sm:$0xff]  ;;  %v1370_v15 = vld [vmem:[%s5818_s25 + $0x10] sm:$0xff]  ;;  %s5847_s28 = smov 32  }
  0x28   : > { %3351 = vmatprep.subr.bf16.mxu0 %v3350_v35  ;;  %v1378_v20 = vld [vmem:[%s5818_s25 + $0x50] sm:$0xff] }
  0x29   : > { %v1374_v23 = vld [vmem:[%s5818_s25 + $0x30] sm:$0xff] }
  0x2a   : > { %3178 = vmatmul.mubr.msk.f32.gmra.mrb[2].mxu0 %vm771_vm3, %v753_v41 }
  0x2b   : > { %3353 = vmatpush1.bf16.msra.mxu0 %v3352_v40  ;;  %864 = vmatprep.mubr.f32.mxu0 %v3885_v7 }
  0x2c   : > { %3355 = vmatprep.subr.bf16.mxu0 %v3354_v42 }
  0x2e   : > { %3179 = vmatmul.mubr.msk.f32.gmra.mrb[4].mxu0 %vm771_vm3, %v754_v48 }
  0x2f   : > { %3357 = vmatpush1.bf16.msra.mxu0 %v3356_v47  ;;  %987 = vmatprep.mubr.f32.mxu0 %v3885_v7 }
  0x30   : > { %3360 = vmatprep.subr.msk.bf16.mxu0 %vm4081_vm2, %v3358_v49 }
  0x33   : > { %3363 = vmatpush1.bf16.msk.msra.mxu0 %vm4081_vm2, %v3361_v54 }
  0x34   : > { %3365 = vmatprep.subr.bf16.mxu0 %v3364_v55 }
  0x36   : > { %3198 = vmatmul.mubr.msk.f32.vlgmr.msra.gmra.mrb[0].mxu0 %vm771_vm3, %v888_v60 }
  0x37   : > { %3367 = vmatpush1.bf16.msra.mxu0 %v3366_v61  ;;  %993 = vmatprep.mubr.f32.mxu0 %v3885_v7 }
  0x38   : > { %3369 = vmatprep.subr.bf16.mxu0 %v3368_v62 }
  0x3a   : > { %3199 = vmatmul.mubr.msk.f32.gmra.mrb[2].mxu0 %vm771_vm3, %v889_v4 }
  0x3b   : > { %3371 = vmatpush1.bf16.msra.mxu0 %v3370_v3  ;;  %999 = vmatprep.mubr.f32.mxu0 %v3885_v7 }
  0x3c   : > { %3373 = vmatprep.subr.bf16.mxu0 %v3372_v5 }
  0x3e   : > { %3200 = vmatmul.mubr.msk.f32.gmra.mrb[4].mxu0 %vm771_vm3, %v890_v12  ;;  %v3382_v12 = vpack.c.bf16 %v1372_v10, %v1369_v9  ;;  %v1402_v9 = vld [vmem:[%s5818_s25 + $0x110] sm:$0xff] }
  0x3f   : > { %3375 = vmatpush1.bf16.msra.mxu0 %v3374_v11  ;;  %1111 = vmatprep.mubr.f32.mxu0 %v3885_v7  ;;  %v1368_v11 = vld [vmem:[%s5818_s25] sm:$0xff] }
  0x40   : > { %3378 = vmatprep.subr.msk.bf16.mxu0 %vm4081_vm2, %v3376_v13  ;;  %v3888_v13 = vmov 0.0|0.0   ;;  %3383 = vmatprep.subr.bf16.mxu1 %v3382_v12  ;;  %v1398_v12 = vld [vmem:[%s5818_s25 + $0xf0] sm:$0xff] }
  0x43   : > { %3381 = vmatpush1.bf16.msk.msra.mxu0 %vm4081_vm2, %v3379_v16  ;;  %v1373_v16 = vld [vmem:[%s5818_s25 + $0x28] sm:$0xff] }
  0x44   : > { %3430 = vmatprep.subr.bf16.mxu0 %v3888_v13 }
  0x46   : > { %3219 = vmatmul.mubr.msk.f32.vlgmr.msra.gmra.mrb[0].mxu0 %vm771_vm3, %v1012_v17  ;;  %v3384_v17 = vpack.c.bf16 %v1371_v14, %v1368_v11 }
  0x47   : > { %1117 = vmatprep.mubr.f32.mxu0 %v3885_v7 }
  0x48   : > { %3385 = vmatpush1.bf16.msra.mxu1 %v3384_v17  ;;  %v1403_v17 = vld [vmem:[%s5818_s25 + $0x118] sm:$0xff] }
  0x4a   : > { %3220 = vmatmul.mubr.msk.f32.gmra.mrb[2].mxu0 %vm771_vm3, %v1013_v18  ;;  %v3431_v18 = vpack.c.bf16 %v1373_v16, %v1370_v15  ;;  %v1401_v15 = vld [vmem:[%s5818_s25 + $0x108] sm:$0xff]  ;;  %v1400_v16 = vld [vmem:[%s5818_s25 + $0x100] sm:$0xff] }
  0x4b   : > { %1123 = vmatprep.mubr.f32.mxu0 %v3885_v7 }
  0x4c   : > { %3432 = vmatpush1.bf16.msra.mxu0 %v3431_v18  ;;  %v1405_v18 = vld [vmem:[%s5818_s25 + $0x128] sm:$0xff] }
  0x4d   : > { %3433 = vmatprep.subr.bf16.mxu0 %v3888_v13 }
  0x4e   : > { %3221 = vmatmul.mubr.msk.f32.gmra.mrb[4].mxu0 %vm771_vm3, %v1014_v19  ;;  %v1375_v19 = vld [vmem:[%s5818_s25 + $0x38] sm:$0xff] }
 0x119   : > { %v1113_v25 = vpop.f32.mrb[0].mxu0 }
 0x11a   : > { %v3805_v26 = vadd.f32 %v1113_v25, %v875_v24  ;;  %v1115_v27 = vpop.f32.mrb[1].mxu0  ;;  %v1377_v25 = vld [vmem:[%s5818_s25 + $0x48] sm:$0xff] }
 0x11b   : > { %v3806_v45 = vadd.f32 %v1115_v27, %v879_v44  ;;  %v1379_v27 = vld [vmem:[%s5818_s25 + $0x58] sm:$0xff] }
 0x11c   : > { %v4231_v28 = vmax.f32 %v3805_v26, 0.0  ;;  %v1376_v26 = vld [vmem:[%s5818_s25 + $0x40] sm:$0xff] }
 0x11d   : > { %v1119_v29 = vpop.f32.mrb[2].mxu0  ;;  %v4277_v46 = vmax.f32 %v3806_v45, 0.0  ;;  %v1390_v45 = vld [vmem:[%s5818_s25 + $0xb0] sm:$0xff] }
 0x11e   : > { %v3807_v30 = vadd.f32 %v1119_v29, %v875_v24  ;;  %1145 = vrot.lane.b32.xlu0 %v4231_v28, %s5796_s24  ;;  %v1121_v31 = vpop.f32.mrb[3].mxu0  ;;  %v3388_v29 = vpack.c.bf16 %v1377_v25, %v1374_v23  ;;  %v3446_v23 = vpack.c.bf16 %v1403_v17, %v1400_v16  ;;  %v1432_v16 = vld [vmem:[%s5818_s25 + $0x200] sm:$0xff] }
 0x11f   : > { %v3808_v47 = vadd.f32 %v1121_v31, %v879_v44  ;;  %v1381_v31 = vld [vmem:[%s5818_s25 + $0x68] sm:$0xff] }
 0x120   : > { %v4235_v32 = vmax.f32 %v3807_v30, 0.0  ;;  %v3434_v30 = vpack.c.bf16 %v1379_v27, %v1376_v26  ;;  %v1407_v26 = vld [vmem:[%s5818_s25 + $0x138] sm:$0xff]  ;;  %v1406_v27 = vld [vmem:[%s5818_s25 + $0x130] sm:$0xff] }
 0x121   : > { %v1125_v33 = vpop.f32.mrb[4].mxu0  ;;  %v4295_v51 = vmax.f32 %v3808_v47, 0.0 }
 0x122   : > { %v3809_v34 = vadd.f32 %v1125_v33, %v875_v24  ;;  %1147 = vrot.lane.b32.xlu0 %v4235_v32, %s5796_s24  ;;  %v1127_v35 = vpop.f32.mrb[5].mxu0  ;;  %v3386_v24 = vpack.c.bf16 %v1378_v20, %v1375_v19  ;;  %v1384_v33 = vld [vmem:[%s5818_s25 + $0x80] sm:$0xff]  ;;  %3435 = vmatpush1.bf16.msra.mxu0 %v3434_v30  ;;  %v3404_v20 = vpack.c.bf16 %v1401_v15, %v1398_v12  ;;  %v1411_v30 = vld [vmem:[%s5818_s25 + $0x158] sm:$0xff]  ;;  %v1429_v15 = vld [vmem:[%s5818_s25 + $0x1e8] sm:$0xff] }
 0x123   : > { %v3810_v52 = vadd.f32 %v1127_v35, %v879_v44  ;;  %v3390_v35 = vpack.c.bf16 %v1384_v33, %v1381_v31  ;;  %v1387_v44 = vld [vmem:[%s5818_s25 + $0x98] sm:$0xff]  ;;  %3436 = vmatprep.subr.bf16.mxu0 %v3888_v13  ;;  %v1408_v19 = vld [vmem:[%s5818_s25 + $0x140] sm:$0xff]  ;;  %v1414_v31 = vld [vmem:[%s5818_s25 + $0x170] sm:$0xff] }
 0x124   : > { %v4239_v36 = vmax.f32 %v3809_v34, 0.0  ;;  %v1380_v34 = vld [vmem:[%s5818_s25 + $0x60] sm:$0xff]  ;;  %3387 = vmatprep.subr.bf16.mxu1 %v3386_v24  ;;  %v3406_v25 = vpack.c.bf16 %v1408_v19, %v1405_v18  ;;  %v3422_v18 = vpack.c.bf16 %v1432_v16, %v1429_v15 }
 0x125   : > { %v4315_v56 = vmax.f32 %v3810_v52, 0.0  ;;  %3389 = vmatpush1.bf16.msra.mxu1 %v3388_v29  ;;  %v3394_v52 = vpack.c.bf16 %v1390_v45, %v1387_v44  ;;  %v1404_v24 = vld [vmem:[%s5818_s25 + $0x120] sm:$0xff]  ;;  %v1409_v29 = vld [vmem:[%s5818_s25 + $0x148] sm:$0xff]  ;;  %v1415_v44 = vld [vmem:[%s5818_s25 + $0x178] sm:$0xff] }
 0x126   : > { %1149 = vrot.lane.b32.xlu1 %v4239_v36, %s5796_s24  ;;  %3391 = vmatprep.subr.bf16.mxu1 %v3390_v35  ;;  %v3408_v33 = vpack.c.bf16 %v1407_v26, %v1404_v24  ;;  %v1410_v35 = vld [vmem:[%s5818_s25 + $0x150] sm:$0xff]  ;;  %v1417_v45 = vld [vmem:[%s5818_s25 + $0x188] sm:$0xff]  ;;  %v1428_v19 = vld [vmem:[%s5818_s25 + $0x1e0] sm:$0xff] }
 0x127   : > { %v1433_v26 = vld [vmem:[%s5818_s25 + $0x208] sm:$0xff]  ;;  %v1440_v15 = vld [vmem:[%s5827_s3] sm:$0x7] }
 0x128   : > { %v1445_v16 = vrot.slane %v1440_v15, %v4225_v22 }
 0x190   : > { %v4243_v37 = vpop.permute.xlu0 %1145 }
 0x191   : > { %vm1154_vm4 = vcmp.gt.f32.partialorder %v4231_v28, %v4243_v37 }
 0x192   : > { %v1157_v38 = vsel %vm1154_vm4, %v4231_v28, %v4243_v37 }
 0x193   : > { %1166 = vrot.lane.b32.xlu1 %v1157_v38, %s5796_s24  ;;  %v1383_v38 = vld [vmem:[%s5818_s25 + $0x78] sm:$0xff] }
 0x194   : > { %v4253_v39 = vpop.permute.xlu0 %1147  ;;  %v3392_v47 = vpack.c.bf16 %v1383_v38, %v1380_v34  ;;  %v3449_v34 = vpack.c.bf16 %v1409_v29, %v1406_v27  ;;  %v3410_v38 = vpack.c.bf16 %v1414_v31, %v1411_v30  ;;  %v1435_v31 = vld [vmem:[%s5818_s25 + $0x218] sm:$0xff] }
 0x195   : > { %vm1155_vm5 = vcmp.gt.f32.partialorder %v4235_v32, %v4253_v39 }
 0x196   : > { %v1158_v40 = vsel %vm1155_vm5, %v4235_v32, %v4253_v39  ;;  %3393 = vmatpush1.bf16.msra.mxu1 %v3392_v47  ;;  %v1420_v47 = vld [vmem:[%s5818_s25 + $0x1a0] sm:$0xff]  ;;  %v1775_v39 = vld [vmem:[%s5764_s9 + $0x18] sm:$0xff] }
 0x197   : > { %1168 = vrot.lane.b32.xlu0 %v1158_v40, %s5796_s24  ;;  %v1382_v40 = vld [vmem:[%s5818_s25 + $0x70] sm:$0xff]  ;;  %3395 = vmatprep.subr.bf16.mxu1 %v3394_v52  ;;  %v1416_v52 = vld [vmem:[%s5818_s25 + $0x180] sm:$0xff] }
 0x198   : > { %v4263_v41 = vpop.permute.xlu1 %1149 }
 0x199   : > { %vm1156_vm6 = vcmp.gt.f32.partialorder %v4239_v36, %v4263_v41 }
 0x19a   : > { %v1159_v42 = vsel %vm1156_vm6, %v4239_v36, %v4263_v41 }
 0x19b   : > { %1170 = vrot.lane.b32.xlu1 %v1159_v42, %s5796_s24  ;;  %v1385_v42 = vld [vmem:[%s5818_s25 + $0x88] sm:$0xff] }
 0x205   : > { %v4279_v48 = vpop.permute.xlu1 %1166 }
 0x206   : > { %vm1176_vm7 = vcmp.gt.f32.partialorder %v4277_v46, %v4279_v48  ;;  %vm1175_vm8 = vcmp.gt.f32.partialorder %v4231_v28, %v4279_v48 }
 0x207   : > { %v1182_v49 = vsel %vm1176_vm7, %v4277_v46, %v4279_v48  ;;  %v1181_v50 = vsel %vm1175_vm8, %v4231_v28, %v4279_v48  ;;  %v1774_v28 = vld [vmem:[%s5764_s9 + $0x10] sm:$0xff] }
 0x208   : > { %1213 = vrot.lane.b32.xlu1 %v1182_v49, %s5796_s24  ;;  %1211 = vrot.lane.b32.xlu0 %v1181_v50, %s5796_s24  ;;  %v3437_v49 = vpack.c.bf16 %v1385_v42, %v1382_v40  ;;  %v1386_v50 = vld [vmem:[%s5818_s25 + $0x90] sm:$0xff]  ;;  %v1413_v40 = vld [vmem:[%s5818_s25 + $0x168] sm:$0xff] }
 0x209   : > { %v4299_v53 = vpop.permute.xlu0 %1168  ;;  %v1412_v42 = vld [vmem:[%s5818_s25 + $0x160] sm:$0xff] }
 0x20a   : > { %vm5789_vm9 = vcmp.gt.f32.partialorder %v4295_v51, %v4299_v53  ;;  %vm1177_vm10 = vcmp.gt.f32.partialorder %v4235_v32, %v4299_v53  ;;  %3438 = vmatpush1.bf16.msra.mxu0 %v3437_v49  ;;  %v3412_v49 = vpack.c.bf16 %v1413_v40, %v1410_v35  ;;  %v1437_v40 = vld [vmem:[%s5818_s25 + $0x228] sm:$0xff] }
 0x20b   : > { %v1184_v54 = vsel %vm5789_vm9, %v4295_v51, %v4299_v53  ;;  %v1183_v55 = vsel %vm1177_vm10, %v4235_v32, %v4299_v53  ;;  %3439 = vmatprep.subr.bf16.mxu0 %v3888_v13  ;;  %vm1364_vm9 = vcmask 785408  }
 0x20c   : > { %1217 = vrot.lane.b32.xlu1 %v1184_v54, %s5796_s24  ;;  %1215 = vrot.lane.b32.xlu0 %v1183_v55, %s5796_s24  ;;  %v1389_v54 = vld [vmem:[%s5818_s25 + $0xa8] sm:$0xff]  ;;  %v1388_v55 = vld [vmem:[%s5818_s25 + $0xa0] sm:$0xff] }
 0x20d   : > { %v4319_v57 = vpop.permute.xlu1 %1170 }
 0x20e   : > { %vm1179_vm11 = vcmp.gt.f32.partialorder %v4239_v36, %v4319_v57  ;;  %vm1180_vm12 = vcmp.gt.f32.partialorder %v4315_v56, %v4319_v57 }
 0x20f   : > { %v1185_v58 = vsel %vm1179_vm11, %v4239_v36, %v4319_v57  ;;  %v1186_v59 = vsel %vm1180_vm12, %v4315_v56, %v4319_v57  ;;  %v1778_v57 = vld [vmem:[%s5764_s9 + $0x30] sm:$0xff] }
 0x210   : > { %1219 = vrot.lane.b32.xlu0 %v1185_v58, %s5796_s24  ;;  %1221 = vrot.lane.b32.xlu1 %v1186_v59, %s5796_s24  ;;  %v1391_v58 = vld [vmem:[%s5818_s25 + $0xb8] sm:$0xff]  ;;  %v1393_v59 = vld [vmem:[%s5818_s25 + $0xc8] sm:$0xff] }
 0x27a   : > { %v1212_v60 = vpop.permute.xlu0 %1211  ;;  %v1214_v61 = vpop.permute.xlu1 %1213 }
 0x27b   : > { %v4338_v62 = vsel %vm5801_vm13, %v1212_v60, %v1214_v61  ;;  %v1396_v60 = vld [vmem:[%s5818_s25 + $0xe0] sm:$0xff]  ;;  %v3396_v61 = vpack.c.bf16 %v1389_v54, %v1386_v50  ;;  %v3452_v50 = vpack.c.bf16 %v1415_v44, %v1412_v42  ;;  %v3414_v54 = vpack.c.bf16 %v1420_v47, %v1417_v45  ;;  %v1439_v47 = vld [vmem:[%s5818_s25 + $0x238] sm:$0xff] }
 0x27c   : > { %vm5788_vm14 = vcmp.gt.f32.partialorder %v4277_v46, %v4338_v62  ;;  %v1436_v42 = vld [vmem:[%s5818_s25 + $0x220] sm:$0xff] }
 0x27d   : > { %v1233_v63 = vsel %vm5788_vm14, %v4277_v46, %v4338_v62  ;;  %3397 = vmatpush1.bf16.msra.mxu1 %v3396_v61  ;;  %v1426_v61 = vld [vmem:[%s5818_s25 + $0x1d0] sm:$0xff]  ;;  %vm1457_vm14 = vcmask 523264   ;;  %v1790_v44 = vld [vmem:[%s5765_s10] sm:$0x1] }
 0x27e   : > { %v1216_v0 = vpop.permute.xlu0 %1215  ;;  %1266 = vrot.lane.b32.xlu0 %v1233_v63, %s5796_s24  ;;  %v1218_v1 = vpop.permute.xlu1 %1217  ;;  %v3440_v63 = vpack.c.bf16 %v1391_v58, %v1388_v55  ;;  %v1419_v55 = vld [vmem:[%s5818_s25 + $0x198] sm:$0xff]  ;;  %v1418_v58 = vld [vmem:[%s5818_s25 + $0x190] sm:$0xff] }
 0x27f   : > { %v4349_v2 = vsel %vm5801_vm13, %v1216_v0, %v1218_v1  ;;  %v1392_v0 = vld [vmem:[%s5818_s25 + $0xc0] sm:$0xff]  ;;  %v3398_v1 = vpack.c.bf16 %v1396_v60, %v1393_v59  ;;  %v1421_v59 = vld [vmem:[%s5818_s25 + $0x1a8] sm:$0xff]  ;;  %v1423_v60 = vld [vmem:[%s5818_s25 + $0x1b8] sm:$0xff] }
 0x280   : > { %vm5785_vm15 = vcmp.gt.f32.partialorder %v4295_v51, %v4349_v2  ;;  %3441 = vmatpush1.bf16.msra.mxu0 %v3440_v63  ;;  %v3416_v63 = vpack.c.bf16 %v1419_v55, %v1416_v52  ;;  %v3464_v52 = vpack.c.bf16 %v1439_v47, %v1436_v42  ;;  %v1452_v42 = vsub.s32 2, %v4222_v21  ;;  %v1965_v55 = vld [vmem:[%s5768_s13] sm:$0xff] }
 0x281   : > { %v1234_v3 = vsel %vm5785_vm15, %v4295_v51, %v4349_v2  ;;  %3399 = vmatprep.subr.bf16.mxu1 %v3398_v1  ;;  %3442 = vmatprep.subr.bf16.mxu0 %v3888_v13  ;;  %v1422_v1 = vld [vmem:[%s5818_s25 + $0x1b0] sm:$0xff] }
 0x282   : > { %v1220_v4 = vpop.permute.xlu0 %1219  ;;  %1268 = vrot.lane.b32.xlu1 %v1234_v3, %s5796_s24  ;;  %v1222_v5 = vpop.permute.xlu1 %1221  ;;  %v1395_v3 = vld [vmem:[%s5818_s25 + $0xd8] sm:$0xff] }
 0x283   : > { %v4360_v6 = vsel %vm5801_vm13, %v1220_v4, %v1222_v5  ;;  %v1394_v4 = vld [vmem:[%s5818_s25 + $0xd0] sm:$0xff]  ;;  %v1397_v5 = vld [vmem:[%s5818_s25 + $0xe8] sm:$0xff]  ;;  %v3400_v10 = vpack.c.bf16 %v1395_v3, %v1392_v0  ;;  %v3455_v0 = vpack.c.bf16 %v1421_v59, %v1418_v58  ;;  %v3418_v3 = vpack.c.bf16 %v1426_v61, %v1423_v60 }
 0x284   : > { %vm5786_vm1 = vcmp.gt.f32.partialorder %v4315_v56, %v4360_v6  ;;  %v3443_v11 = vpack.c.bf16 %v1397_v5, %v1394_v4  ;;  %v1425_v4 = vld [vmem:[%s5818_s25 + $0x1c8] sm:$0xff]  ;;  %v1424_v5 = vld [vmem:[%s5818_s25 + $0x1c0] sm:$0xff] }
 0x285   : > { %v1235_v8 = vsel %vm5786_vm1, %v4315_v56, %v4360_v6  ;;  %3401 = vmatpush1.bf16.msra.mxu1 %v3400_v10 }
 0x286   : > { %1270 = vrot.lane.b32.xlu0 %v1235_v8, %s5796_s24  ;;  %v1399_v8 = vld [vmem:[%s5818_s25 + $0xf8] sm:$0xff]  ;;  %3444 = vmatpush1.bf16.msra.mxu0 %v3443_v11 }
 0x287   : > { %v3402_v14 = vpack.c.bf16 %v1402_v9, %v1399_v8  ;;  %3445 = vmatprep.subr.bf16.mxu0 %v3888_v13  ;;  %v1427_v8 = vld [vmem:[%s5818_s25 + $0x1d8] sm:$0xff]  ;;  %v3420_v9 = vpack.c.bf16 %v1425_v4, %v1422_v1 }
 0x288   : > { %v3458_v10 = vpack.c.bf16 %v1427_v8, %v1424_v5 }
 0x289   : > { %3403 = vmatprep.subr.bf16.mxu1 %v3402_v14 }
 0x28a   : > { %3405 = vmatpush1.bf16.msra.mxu1 %v3404_v20  ;;  %3447 = vmatpush1.bf16.msra.mxu0 %v3446_v23  ;;  %v1431_v20 = vld [vmem:[%s5818_s25 + $0x1f8] sm:$0xff]  ;;  %v1430_v23 = vld [vmem:[%s5818_s25 + $0x1f0] sm:$0xff] }
 0x28b   : > { %3407 = vmatprep.subr.bf16.mxu1 %v3406_v25  ;;  %3448 = vmatprep.subr.bf16.mxu0 %v3888_v13  ;;  %v3424_v25 = vpack.c.bf16 %v1431_v20, %v1428_v19  ;;  %v3461_v29 = vpack.c.bf16 %v1433_v26, %v1430_v23 }
 0x28e   : > { %3409 = vmatpush1.bf16.msra.mxu1 %v3408_v33  ;;  %3450 = vmatpush1.bf16.msra.mxu0 %v3449_v34  ;;  %v1438_v33 = vld [vmem:[%s5818_s25 + $0x230] sm:$0xff] }
 0x28f   : > { %3411 = vmatprep.subr.bf16.mxu1 %v3410_v38  ;;  %3451 = vmatprep.subr.bf16.mxu0 %v3888_v13  ;;  %v3426_v35 = vpack.c.bf16 %v1438_v33, %v1435_v31  ;;  %v1434_v38 = vld [vmem:[%s5818_s25 + $0x210] sm:$0xff] }
 0x290   : > { %v3428_v45 = vpack.c.bf16 %v1437_v40, %v1434_v38 }
 0x292   : > { %3413 = vmatpush1.bf16.msra.mxu1 %v3412_v49  ;;  %3453 = vmatpush1.bf16.msra.mxu0 %v3452_v50 }
 0x293   : > { %3415 = vmatprep.subr.bf16.mxu1 %v3414_v54  ;;  %3454 = vmatprep.subr.bf16.mxu0 %v3888_v13 }
 0x296   : > { %3417 = vmatpush1.bf16.msra.mxu1 %v3416_v63  ;;  %3456 = vmatpush1.bf16.msra.mxu0 %v3455_v0 }
 0x297   : > { %3419 = vmatprep.subr.bf16.mxu1 %v3418_v3  ;;  %3457 = vmatprep.subr.bf16.mxu0 %v3888_v13 }
 0x29a   : > { %3421 = vmatpush1.bf16.msra.mxu1 %v3420_v9  ;;  %3459 = vmatpush1.bf16.msra.mxu0 %v3458_v10 }
 0x29b   : > { %3460 = vmatprep.subr.bf16.mxu0 %v3888_v13  ;;  %3423 = vmatprep.subr.bf16.mxu1 %v3422_v18 }
 0x29e   : > { %3425 = vmatpush1.bf16.msra.mxu1 %v3424_v25  ;;  %3462 = vmatpush1.bf16.msra.mxu0 %v3461_v29 }
 0x29f   : > { %3463 = vmatprep.subr.bf16.mxu0 %v3888_v13  ;;  %3427 = vmatprep.subr.bf16.mxu1 %v3426_v35 }
 0x2a2   : > { %3429 = vmatpush1.bf16.msra.mxu1 %v3428_v45  ;;  %3465 = vmatpush1.bf16.msra.mxu0 %v3464_v52  ;;  %v1453_v45 = vrot.slane %v1440_v15, %v1452_v42 }
 0x2f0   : > { %v4561_v11 = vpop.permute.xlu0 %1266 }
 0x2f1   : > { %vm5783_vm2 = vcmp.gt.f32.partialorder %v4277_v46, %v4561_v11 }
 0x2f2   : > { %v1278_v12 = vsel %vm5783_vm2, %v4277_v46, %v4561_v11 }
 0x2f3   : > { %v1297_v14 = vrot.slane %v1278_v12, 4 }
 0x2f4   : > { %v4576_v17 = vpop.permute.xlu1 %1268 }
 0x2f5   : > { %vm4587_vm3 = vcmp.gt.f32.partialorder %v1278_v12, %v1297_v14  ;;  %vm5784_vm0 = vcmp.gt.f32.partialorder %v4295_v51, %v4576_v17 }
 0x2f6   : > { %v1300_v27 = vsel %vm4587_vm3, %v1278_v12, %v1297_v14  ;;  %v1279_v34 = vsel %vm5784_vm0, %v4295_v51, %v4576_v17 }
 0x2f7   : > { %v1307_v30 = vrot.slane %v1300_v27, 4  ;;  %v1449_v27 = vrot.slane %v1440_v15, %v4274_v43  ;;  %v1667_v15 = vld [vmem:[%s5828_s27 + $0x48] sm:$0xff] }
 0x2f8   : > { %v4628_v50 = vpop.permute.xlu0 %1270 }
 0x2f9   : > { %vm4618_vm2 = vcmp.gt.f32.partialorder %v1279_v34, %v1307_v30  ;;  %vm5787_vm15 = vcmp.gt.f32.partialorder %v4315_v56, %v4628_v50 }
 0x2fa   : > { %v1310_v49 = vsel %vm4618_vm2, %v1279_v34, %v1307_v30  ;;  %v1280_v60 = vsel %vm5787_vm15, %v4315_v56, %v4628_v50  ;;  %vm5790_vm15 = vcmask 130048  }
 0x2fb   : > { %v1320_v54 = vrot.slane %v1310_v49, 4 }
 0x2fd   : > { %vm4630_vm0 = vcmp.gt.f32.partialorder %v1279_v34, %v1320_v54 }
 0x2fe   : > { %v1323_v58 = vsel %vm4630_vm0, %v1279_v34, %v1320_v54 }
 0x2ff   : > { %v1333_v59 = vrot.slane %v1323_v58, 4 }
 0x301   : > { %vm4643_vm1 = vcmp.gt.f32.partialorder %v1280_v60, %v1333_v59 }
 0x302   : > { %v1336_v63 = vsel %vm4643_vm1, %v1280_v60, %v1333_v59 }
 0x303   : > { %1348 = vrot.lane.b32.xlu1 %v1336_v63, %s5795_s30  ;;  %v1351_v0 = vrot.slane %v1336_v63, 1  ;;  %v1355_v1 = vrot.slane %v1336_v63, 2  ;;  %v1359_v3 = vrot.slane %v1336_v63, 3  ;;  %v1659_v63 = vld [vmem:[%s5828_s27 + $0x8] sm:$0xff]  ;;  %s5830_s30 = smov 48  }
 0x305   : > { %1352 = vrot.lane.b32.xlu0 %v1351_v0, %s5791_s26  ;;  %v1661_v0 = vld [vmem:[%s5828_s27 + $0x18] sm:$0xff]  ;;  %s5848_s26 = smov 112  }
 0x307   : > { %1356 = vrot.lane.b32.xlu1 %v1355_v1, %s5792_s6  ;;  %v1658_v1 = vld [vmem:[%s5828_s27] sm:$0xff]  ;;  %s5829_s6 = smov 96  }
 0x309   : > { %1360 = vrot.lane.b32.xlu0 %v1359_v3, %s5794_s2  ;;  %v3466_v3 = vpack.c.bf16 %v1661_v0, %v1659_v63  ;;  %v1678_v0 = vld [vmem:[%s5828_s27 + $0xa0] sm:$0xff] }
 0x30b   : > { %3467 = vmatprep.subr.bf16.mxu1 %v3466_v3 }
 0x375   : > { %v1349_v4 = vpop.permute.xlu1 %1348 }
 0x377   : > { %v1353_v5 = vpop.permute.xlu0 %1352 }
 0x378   : > { %v1363_v8 = vsel %vm5801_vm13, %v1349_v4, %v1353_v5  ;;  %v1660_v4 = vld [vmem:[%s5828_s27 + $0x10] sm:$0xff]  ;;  %v1663_v5 = vld [vmem:[%s5828_s27 + $0x28] sm:$0xff] }
 0x379   : > { %v1357_v9 = vpop.permute.xlu1 %1356 }
 0x37a   : > { %v1365_v14 = vsel %vm1364_vm9, %v1363_v8, %v1357_v9  ;;  %v1665_v8 = vld [vmem:[%s5828_s27 + $0x38] sm:$0xff] }
 0x37b   : > { %v1361_v10 = vpop.permute.xlu0 %1360 }
 0x37c   : > { %v1367_v12 = vsel %vm5790_vm15, %v1357_v9, %v1361_v10  ;;  %v3468_v9 = vpack.c.bf16 %v1660_v4, %v1658_v1  ;;  %v3470_v10 = vpack.c.bf16 %v1665_v8, %v1663_v5  ;;  %v1680_v1 = vld [vmem:[%s5828_s27 + $0xb0] sm:$0xff] }
 0x37d   : > { %3222 = vmatprep.mubr.msk.f32.mxu1 %vm1457_vm14, %v1367_v12  ;;  %3223 = vmatprep.mubr.msk.f32.mxu0 %vm1457_vm14, %v1367_v12  ;;  %v1662_v12 = vld [vmem:[%s5828_s27 + $0x20] sm:$0xff]  ;;  %v3488_v3 = vpack.c.bf16 %v1680_v1, %v1678_v0  ;;  %v1781_v1 = vld [vmem:[%s5764_s9 + $0x48] sm:$0xff] }
 0x37e   : > { %1526 = vmatmul.mubr.f32.vlgmr.msra.gmra.mrb[0].mxu1 %v1365_v14  ;;  %1597 = vmatmul.mubr.f32.vlgmr.msra.gmra.mrb[6].mxu0 %v1365_v14  ;;  %v1664_v14 = vld [vmem:[%s5828_s27 + $0x30] sm:$0xff]  ;;  %v1780_v0 = vld [vmem:[%s5764_s9 + $0x40] sm:$0xff] }
 0x37f   : > { %1763 = vmatprep.mubr.f32.mxu1 %v3885_v7  ;;  %1956 = vmatprep.mubr.f32.mxu0 %v3885_v7 }
 0x380   : > { %3469 = vmatpush1.bf16.msra.mxu1 %v3468_v9 }
 0x381   : > { %3471 = vmatprep.subr.bf16.mxu1 %v3470_v10 }
 0x451   : > { %v1527_v18 = vpop.f32.mrb[0].mxu1  ;;  %v1598_v19 = vpop.f32.mrb[6].mxu0 }
 0x452   : > { %v1528_v20 = vadd.f32 %v1527_v18, %v1445_v16  ;;  %v1529_v23 = vpop.f32.mrb[1].mxu1  ;;  %v1600_v25 = vpop.f32.mrb[7].mxu0  ;;  %v1599_v47 = vadd.f32 %v1598_v19, %v1453_v45  ;;  %v1669_v16 = vld [vmem:[%s5828_s27 + $0x58] sm:$0xff]  ;;  %v3472_v18 = vpack.c.bf16 %v1664_v14, %v1662_v12  ;;  %v1674_v45 = vld [vmem:[%s5828_s27 + $0x80] sm:$0xff] }
 0x453   : > { %v1530_v29 = vadd.f32 %v1529_v23, %v1449_v27  ;;  %v3474_v19 = vpack.c.bf16 %v1669_v16, %v1667_v15  ;;  %v1668_v23 = vld [vmem:[%s5828_s27 + $0x50] sm:$0xff]  ;;  %v1671_v25 = vld [vmem:[%s5828_s27 + $0x68] sm:$0xff] }
 0x454   : > { %v1602_v26 = vmax.f32 %v1528_v20, 0.0  ;;  %v4675_v49 = vmax.f32 %v1599_v47, 0.0  ;;  %v1666_v20 = vld [vmem:[%s5828_s27 + $0x40] sm:$0xff]  ;;  %3473 = vmatpush1.bf16.msra.mxu1 %v3472_v18  ;;  %v1676_v47 = vld [vmem:[%s5828_s27 + $0x90] sm:$0xff] }
 0x455   : > { %v4664_v30 = vmax.f32 %v1530_v29, 0.0  ;;  %v3476_v27 = vpack.c.bf16 %v1668_v23, %v1666_v20  ;;  %3475 = vmatprep.subr.bf16.mxu1 %v3474_v19  ;;  %v1160_v20 = vsel %vm1154_vm4, 1.0, %v3885_v7  ;;  %vm5831_vm4 = vcmp.gt.f32.partialorder %v4295_v51, %v4299_v53 }
 0x456   : > { %1606 = vrot.lane.b32.xlu1 %v1602_v26, %s5799_s0 }
 0x458   : > { %3477 = vmatpush1.bf16.msra.mxu1 %v3476_v27 }
 0x4c8   : > { %v1607_v31 = vpop.permute.xlu1 %1606 }
 0x4c9   : > { %vm1610_vm14 = vcmp.gt.f32.partialorder %v4664_v30, %v1607_v31  ;;  %vm1609_vm15 = vcmp.gt.f32.partialorder %v1602_v26, %v1607_v31 }
 0x4ca   : > { %v1612_v33 = vsel %vm1610_vm14, %v4664_v30, %v1607_v31  ;;  %v1611_v34 = vsel %vm1609_vm15, %v1602_v26, %v1607_v31  ;;  %v1613_v35 = vsel %vm1609_vm15, 1.0, %v3885_v7  ;;  %v1614_v38 = vsel %vm1610_vm14, 1.0, %v3885_v7  ;;  %v1673_v26 = vld [vmem:[%s5828_s27 + $0x78] sm:$0xff]  ;;  %v1670_v31 = vld [vmem:[%s5828_s27 + $0x60] sm:$0xff] }
 0x4cb   : > { %1619 = vrot.lane.b32.xlu1 %v1612_v33, %s5799_s0  ;;  %1617 = vrot.lane.b32.xlu0 %v1611_v34, %s5799_s0  ;;  %v3846_v40 = vpack.i.bf16 %v1614_v38, %v1613_v35  ;;  %v3478_v29 = vpack.c.bf16 %v1673_v26, %v1671_v25  ;;  %v1672_v33 = vld [vmem:[%s5828_s27 + $0x70] sm:$0xff]  ;;  %v1675_v34 = vld [vmem:[%s5828_s27 + $0x88] sm:$0xff] }
 0x4cc   : > { %v1677_v35 = vld [vmem:[%s5828_s27 + $0x98] sm:$0xff]  ;;  %v3480_v38 = vpack.c.bf16 %v1672_v33, %v1670_v31  ;;  %v1161_v31 = vsel %vm1155_vm5, 1.0, %v3885_v7  ;;  %v1773_v33 = vld [vmem:[%s5764_s9 + $0x8] sm:$0xff]  ;;  %vm5832_vm5 = vcmask 392192  }
 0x4cd   : > { %3479 = vmatprep.subr.bf16.mxu1 %v3478_v29 }
 0x4ce   : > { %3481 = vmatpush1.bf16.msra.mxu1 %v3480_v38  ;;  %v3494_v38 = vpack.c.bf16 %v1775_v39, %v1774_v28  ;;  %v1682_v28 = vld [vmem:[%s5763_s8] sm:$0x3] }
 0x53d   : > { %v4677_v52 = vpop.permute.xlu1 %1619  ;;  %v1618_v54 = vpop.permute.xlu0 %1617 }
 0x53e   : > { %vm1625_vm15 = vcmp.gt.f32.partialorder %v4675_v49, %v4677_v52  ;;  %v4683_v58 = vsel %vm1364_vm9, %v1618_v54, %v4677_v52  ;;  %v1679_v54 = vld [vmem:[%s5828_s27 + $0xa8] sm:$0xff] }
 0x53f   : > { %vm1624_vm14 = vcmp.gt.f32.partialorder %v4664_v30, %v4683_v58  ;;  %v1627_v59 = vsel %vm1625_vm15, %v4675_v49, %v4677_v52  ;;  %v1162_v52 = vsel %vm1156_vm6, 1.0, %v3885_v7  ;;  %vm5833_vm6 = vcmp.gt.f32.partialorder %v4277_v46, %v4338_v62 }
 0x540   : > { %1643 = vrot.lane.b32.xlu1 %v1627_v59, %s5799_s0  ;;  %v1626_v60 = vsel %vm1624_vm14, %v4664_v30, %v4683_v58  ;;  %v1681_v59 = vld [vmem:[%s5828_s27 + $0xb8] sm:$0xff]  ;;  %v1694_v62 = vrot.slane %v1682_v28, %v4274_v43 }
 0x541   : > { %1641 = vrot.lane.b32.xlu0 %v1626_v60, %s5799_s0  ;;  %v3484_v60 = vpack.c.bf16 %v1676_v47, %v1674_v45  ;;  %v3486_v63 = vpack.c.bf16 %v1681_v59, %v1679_v54  ;;  %v1776_v47 = vld [vmem:[%s5764_s9 + $0x20] sm:$0xff]  ;;  %v1777_v54 = vld [vmem:[%s5764_s9 + $0x28] sm:$0xff] }
 0x542   : > { %v3497_v36 = vpack.c.bf16 %v1777_v54, %v1776_v47 }
 0x544   : > { %3847 = vrot.lane.b32.xlu1 %v3846_v40, %s5799_s0  ;;  %v3482_v40 = vpack.c.bf16 %v1677_v35, %v1675_v34 }
 0x546   : > { %3483 = vmatprep.subr.bf16.mxu1 %v3482_v40 }
 0x547   : > { %3485 = vmatpush1.bf16.msra.mxu1 %v3484_v60  ;;  %v1779_v60 = vld [vmem:[%s5764_s9 + $0x38] sm:$0xff] }
 0x548   : > { %3487 = vmatprep.subr.bf16.mxu1 %v3486_v63  ;;  %v3500_v63 = vpack.c.bf16 %v1779_v60, %v1778_v57  ;;  %v1865_v57 = vld [vmem:[%s5766_s11] sm:$0xff] }
 0x54b   : > { %3489 = vmatpush1.bf16.msra.mxu1 %v3488_v3  ;;  %v3503_v3 = vpack.c.bf16 %v1781_v1, %v1780_v0  ;;  %v1867_v0 = vld [vmem:[%s5766_s11 + $0x10] sm:$0xff]  ;;  %v1870_v1 = vld [vmem:[%s5766_s11 + $0x28] sm:$0xff] }
 0x54c   : > { %3490 = vmatprep.subr.bf16.mxu1 %v3888_v13 }
 0x5b2   : > { %v1644_v4 = vpop.permute.xlu1 %1643 }
 0x5b3   : > { %v1642_v5 = vpop.permute.xlu0 %1641 }
 0x5b4   : > { %v1645_v8 = vsel %vm1364_vm9, %v1642_v5, %v1644_v4  ;;  %v1782_v4 = vld [vmem:[%s5764_s9 + $0x50] sm:$0xff]  ;;  %v1783_v5 = vld [vmem:[%s5764_s9 + $0x58] sm:$0xff] }
 0x5b5   : > { %vm1647_vm13 = vcmp.gt.f32.partialorder %v4675_v49, %v1645_v8 }
 0x5b6   : > { %v3848_v9 = vpop.permute.xlu1 %3847  ;;  %v1648_v10 = vsel %vm1647_vm13, %v4675_v49, %v1645_v8  ;;  %v1772_v49 = vld [vmem:[%s5764_s9] sm:$0xff]  ;;  %v3506_v8 = vpack.c.bf16 %v1783_v5, %v1782_v4  ;;  %v3519_v5 = vpack.c.bf16 %v1867_v0, %v1865_v57 }
 0x5b7   : > { %v3850_v12 = vunpack.i.h.bf16 %v3848_v9  ;;  %v3849_v14 = vunpack.i.l.bf16 %v3848_v9  ;;  %1684 = vrot.lane.b32.xlu0 %v1648_v10, %s5829_s6  ;;  %v3491_v48 = vpack.c.bf16 %v1773_v33, %v1772_v49  ;;  %v1784_v9 = vld [vmem:[%s5764_s9 + $0x60] sm:$0xff]  ;;  %v1785_v10 = vld [vmem:[%s5764_s9 + $0x68] sm:$0xff] }
 0x5b9   : > { %v1638_v15 = vsel %vm1625_vm15, 2.0, %v3850_v12  ;;  %v1634_v16 = vsel %vm1364_vm9, %v3849_v14, %v3850_v12  ;;  %v3509_v12 = vpack.c.bf16 %v1785_v10, %v1784_v9  ;;  %v1786_v14 = vld [vmem:[%s5764_s9 + $0x70] sm:$0xff]  ;;  %v1869_v9 = vld [vmem:[%s5766_s11 + $0x20] sm:$0xff]  ;;  %vm5840_vm15 = vcmp.gt.f32.partialorder %v4295_v51, %v4576_v17 }
 0x5ba   : > { %v1637_v18 = vsel %vm1624_vm14, 2.0, %v1634_v16  ;;  %v1871_v10 = vld [vmem:[%s5766_s11 + $0x30] sm:$0xff] }
 0x5bb   : > { %v3851_v19 = vpack.i.bf16 %v1638_v15, %v1637_v18  ;;  %v1787_v15 = vld [vmem:[%s5764_s9 + $0x78] sm:$0xff]  ;;  %v1788_v18 = vld [vmem:[%s5764_s9 + $0x80] sm:$0xff] }
 0x5bc   : > { %v3512_v16 = vpack.c.bf16 %v1787_v15, %v1786_v14  ;;  %v1876_v14 = vld [vmem:[%s5766_s11 + $0x58] sm:$0xff] }
 0x5bd   : > { %3852 = vrot.lane.b32.xlu0 %v3851_v19, %s5829_s6  ;;  %v1789_v19 = vld [vmem:[%s5764_s9 + $0x88] sm:$0xff] }
 0x5c1   : > { %1190 = vrot.lane.b32.xlu0 %v1160_v20, %s5830_s30  ;;  %v3515_v20 = vpack.c.bf16 %v1789_v19, %v1788_v18  ;;  %v1875_v18 = vld [vmem:[%s5766_s11 + $0x50] sm:$0xff] }
 0x5c5   : > { %1194 = vrot.lane.b32.xlu0 %v1162_v52, %s5830_s30 }
 0x629   : > { %v1685_v23 = vpop.permute.xlu0 %1684 }
 0x62a   : > { %3224 = vmatmul.mubr.msk.f32.vlgmr.msra.gmra.mrb[2].mxu1 %vm1364_vm9, %v1685_v23 }
 0x62b   : > { %3492 = vmatpush1.bf16.msra.mxu1 %v3491_v48 }
 0x62c   : > { %3493 = vmatprep.subr.bf16.mxu1 %v3888_v13 }
 0x62f   : > { %v3853_v30 = vpop.permute.xlu0 %3852  ;;  %3495 = vmatpush1.bf16.msra.mxu1 %v3494_v38 }
 0x630   : > { %v3855_v58 = vunpack.i.h.bf16 %v3853_v30  ;;  %v3854_v25 = vunpack.i.l.bf16 %v3853_v30  ;;  %3496 = vmatprep.subr.bf16.mxu1 %v3888_v13 }
 0x632   : > { %v1655_v26 = vsel %vm1364_vm9, %v3854_v25, %v3855_v58 }
 0x633   : > { %v1191_v27 = vpop.permute.xlu0 %1190  ;;  %v1657_v37 = vsel %vm1647_vm13, 3.0, %v1655_v26  ;;  %3498 = vmatpush1.bf16.msra.mxu1 %v3497_v36  ;;  %v1868_v36 = vld [vmem:[%s5766_s11 + $0x18] sm:$0xff]  ;;  %vm5839_vm13 = vcmp.gt.f32.partialorder %v4277_v46, %v4561_v11 }
 0x634   : > { %2238 = vrot.lane.b32.xlu1 %v1657_v37, %s5829_s6  ;;  %v1199_v41 = vsel %vm1175_vm8, 2.0, %v1191_v27  ;;  %v1200_v29 = vsel %vm1176_vm7, 2.0, %v1191_v27  ;;  %3499 = vmatprep.subr.bf16.mxu1 %v3888_v13  ;;  %vm5834_vm7 = vmmov %vm5832_vm5  ;;  %vm5835_vm8 = vcmp.gt.f32.partialorder %v4315_v56, %v4360_v6 }
 0x635   : > { %v3856_v35 = vpack.i.bf16 %v1200_v29, %v1199_v41 }
 0x637   : > { %v1195_v34 = vpop.permute.xlu0 %1194  ;;  %3501 = vmatpush1.bf16.msra.mxu1 %v3500_v63 }
 0x638   : > { %1192 = vrot.lane.b32.xlu1 %v1161_v31, %s5830_s30  ;;  %v1203_v40 = vsel %vm1179_vm11, 2.0, %v1195_v34  ;;  %v1204_v45 = vsel %vm1180_vm12, 2.0, %v1195_v34  ;;  %3502 = vmatprep.subr.bf16.mxu1 %v3888_v13  ;;  %v1690_v34 = vrot.slane %v1682_v28, %v4225_v22  ;;  %vm5837_vm11 = vmmov %vm5832_vm5  ;;  %vm5838_vm12 = vcmp.gt.f32.partialorder %v4295_v51, %v4349_v2  ;;  %v1874_v2 = vld [vmem:[%s5766_s11 + $0x48] sm:$0xff] }
 0x639   : > { %v3866_v59 = vpack.i.bf16 %v1204_v45, %v1203_v40  ;;  %v3525_v15 = vpack.c.bf16 %v1876_v14, %v1874_v2  ;;  %v1981_v14 = vld [vmem:[%s5768_s13 + $0x80] sm:$0xff] }
 0x63b   : > { %3504 = vmatpush1.bf16.msra.mxu1 %v3503_v3  ;;  %v1872_v3 = vld [vmem:[%s5766_s11 + $0x38] sm:$0xff] }
 0x63c   : > { %3857 = vrot.lane.b32.xlu1 %v3856_v35, %s5830_s30  ;;  %3505 = vmatprep.subr.bf16.mxu1 %v3888_v13 }
 0x63f   : > { %3507 = vmatpush1.bf16.msra.mxu1 %v3506_v8  ;;  %v3521_v8 = vpack.c.bf16 %v1872_v3, %v1870_v1  ;;  %v1975_v1 = vld [vmem:[%s5768_s13 + $0x50] sm:$0xff]  ;;  %v1976_v3 = vld [vmem:[%s5768_s13 + $0x58] sm:$0xff] }
 0x640   : > { %3867 = vrot.lane.b32.xlu1 %v3866_v59, %s5830_s30  ;;  %3508 = vmatprep.subr.bf16.mxu1 %v3888_v13  ;;  %v1866_v59 = vld [vmem:[%s5766_s11 + $0x8] sm:$0xff] }
 0x641   : > { %v3517_v63 = vpack.c.bf16 %v1868_v36, %v1866_v59  ;;  %v1971_v59 = vld [vmem:[%s5768_s13 + $0x30] sm:$0xff]  ;;  %v1972_v36 = vld [vmem:[%s5768_s13 + $0x38] sm:$0xff] }
 0x642   : > { %v3539_v57 = vpack.c.bf16 %v1972_v36, %v1971_v59 }
 0x643   : > { %3510 = vmatpush1.bf16.msra.mxu1 %v3509_v12  ;;  %3518 = vmatprep.subr.bf16.mxu0 %v3517_v63  ;;  %v3523_v12 = vpack.c.bf16 %v1871_v10, %v1869_v9  ;;  %v1974_v63 = vld [vmem:[%s5768_s13 + $0x48] sm:$0xff]  ;;  %v1979_v10 = vld [vmem:[%s5768_s13 + $0x70] sm:$0xff] }
 0x644   : > { %3511 = vmatprep.subr.bf16.mxu1 %v3888_v13  ;;  %3520 = vmatpush1.bf16.msra.mxu0 %v3519_v5  ;;  %v1977_v5 = vld [vmem:[%s5768_s13 + $0x60] sm:$0xff] }
 0x645   : > { %3522 = vmatprep.subr.bf16.mxu0 %v3521_v8  ;;  %v1978_v8 = vld [vmem:[%s5768_s13 + $0x68] sm:$0xff] }
 0x646   : > { %v3548_v9 = vpack.c.bf16 %v1978_v8, %v1977_v5  ;;  %v2408_v8 = vld [vmem:[%s5772_s17 + $0x10] sm:$0xff] }
 0x647   : > { %3513 = vmatpush1.bf16.msra.mxu1 %v3512_v16  ;;  %v1873_v16 = vld [vmem:[%s5766_s11 + $0x40] sm:$0xff] }
 0x648   : > { %3514 = vmatprep.subr.bf16.mxu1 %v3888_v13  ;;  %3524 = vmatpush1.bf16.msra.mxu0 %v3523_v12  ;;  %v3527_v19 = vpack.c.bf16 %v1875_v18, %v1873_v16  ;;  %v1980_v12 = vld [vmem:[%s5768_s13 + $0x78] sm:$0xff]  ;;  %v2058_v18 = vld [vmem:[%s5770_s15 + $0x8] sm:$0xff] }
 0x649   : > { %3526 = vmatprep.subr.bf16.mxu0 %v3525_v15  ;;  %v3551_v2 = vpack.c.bf16 %v1980_v12, %v1979_v10  ;;  %v1982_v15 = vld [vmem:[%s5768_s13 + $0x88] sm:$0xff]  ;;  %v2413_v10 = vld [vmem:[%s5772_s17 + $0x38] sm:$0xff] }
 0x64a   : > { %v3554_v16 = vpack.c.bf16 %v1982_v15, %v1981_v14  ;;  %v2410_v14 = vld [vmem:[%s5772_s17 + $0x20] sm:$0xff]  ;;  %v2412_v15 = vld [vmem:[%s5772_s17 + $0x30] sm:$0xff] }
 0x64b   : > { %3516 = vmatpush1.bf16.msra.mxu1 %v3515_v20  ;;  %v1305_v20 = vsel %vm4587_vm3, 1.0, %v3885_v7 }
 0x64c   : > { %3528 = vmatpush1.bf16.msra.mxu0 %v3527_v19  ;;  %v2061_v19 = vld [vmem:[%s5770_s15 + $0x20] sm:$0xff] }
 0x64d   : > { %3529 = vmatprep.subr.bf16.mxu0 %v3888_v13 }
 0x6a6   : > { %v4883_v52 = vpop.permute.xlu1 %2238 }
 0x6aa   : > { %v1193_v23 = vpop.permute.xlu1 %1192 }
 0x6ab   : > { %v1201_v30 = vsel %vm1177_vm10, 2.0, %v1193_v23  ;;  %v1202_v58 = vsel %vm5831_vm4, 2.0, %v1193_v23  ;;  %vm5836_vm10 = vcmask 130048   ;;  %v1316_v23 = vrot.slane %v1305_v20, 4 }
 0x6ac   : > { %v3861_v25 = vpack.i.bf16 %v1202_v58, %v1201_v30  ;;  %v3556_v20 = vpack.c.bf16 %v2061_v19, %v2058_v18  ;;  %v2417_v18 = vld [vmem:[%s5772_s17 + $0x58] sm:$0xff]  ;;  %v3646_v19 = vpack.c.bf16 %v2412_v15, %v2410_v14 }
 0x6ad   : > { %v1318_v58 = vsel %vm4618_vm2, 2.0, %v1316_v23  ;;  %v2057_v23 = vld [vmem:[%s5770_s15] sm:$0xff]  ;;  %v2453_v14 = vld [vmem:[%s5772_s17 + $0x178] sm:$0xff] }
 0x6ae   : > { %3862 = vrot.lane.b32.xlu0 %v3861_v25, %s5830_s30  ;;  %v3858_v26 = vpop.permute.xlu1 %3857  ;;  %3557 = vmatprep.subr.bf16.mxu1 %v3556_v20 }
 0x6af   : > { %v3860_v27 = vunpack.i.h.bf16 %v3858_v26  ;;  %v3859_v37 = vunpack.i.l.bf16 %v3858_v26  ;;  %v1329_v26 = vrot.slane %v1318_v58, 4 }
 0x6b1   : > { %v1254_v41 = vsel %vm5832_vm5, %v3859_v37, %v3860_v27  ;;  %v1331_v37 = vsel %vm4630_vm0, 3.0, %v1329_v26  ;;  %v2067_v26 = vld [vmem:[%s5770_s15 + $0x50] sm:$0xff] }
 0x6b2   : > { %v3868_v29 = vpop.permute.xlu1 %3867  ;;  %v1260_v31 = vsel %vm5833_vm6, 3.0, %v1254_v41  ;;  %vm2677_vm6 = vcmask 1040384  }
 0x6b3   : > { %v3870_v49 = vunpack.i.h.bf16 %v3868_v29  ;;  %v3869_v32 = vunpack.i.l.bf16 %v3868_v29  ;;  %1284 = vrot.lane.b32.xlu0 %v1260_v31, %s5830_s30  ;;  %v1342_v29 = vrot.slane %v1331_v37, 4  ;;  %v2063_v37 = vld [vmem:[%s5770_s15 + $0x30] sm:$0xff] }
 0x6b5   : > { %v1256_v53 = vsel %vm5834_vm7, %v3869_v32, %v3870_v49  ;;  %v1344_v11 = vsel %vm4643_vm1, 4.0, %v1342_v29  ;;  %vm2670_vm7 = vcmask 261120  }
 0x6b6   : > { %v1262_v33 = vsel %vm5835_vm8, 3.0, %v1256_v53  ;;  %vm2679_vm8 = vcmask 1041408  }
 0x6b7   : > { %1288 = vrot.lane.b32.xlu0 %v1262_v33, %s5830_s30 }
 0x6fd   : > { %v1765_v48 = vpop.f32.mrb[2].mxu1 }
 0x6fe   : > { %v1766_v39 = vadd.f32 %v1765_v48, %v1690_v34  ;;  %v1767_v35 = vpop.f32.mrb[3].mxu1  ;;  %v1345_v34 = vmul.f32 5.0, %v1344_v11  ;;  %v1966_v48 = vld [vmem:[%s5768_s13 + $0x8] sm:$0xff] }
 0x6ff   : > { %v1768_v38 = vadd.f32 %v1767_v35, %v1694_v62  ;;  %v3530_v61 = vpack.c.bf16 %v1966_v48, %v1965_v55  ;;  %v2081_v48 = vld [vmem:[%s5770_s15 + $0xc0] sm:$0xff] }
 0x700   : > { %v1770_v45 = vmax.f32 %v1766_v39, 0.0 }
 0x701   : > { %v1771_v40 = vmax.f32 %v1768_v38, 0.0  ;;  %v1967_v38 = vld [vmem:[%s5768_s13 + $0x10] sm:$0xff] }
 0x703   : > { %3225 = vmatprep.mubr.msk.f32.mxu1 %vm5836_vm10, %v1771_v40  ;;  %v1968_v40 = vld [vmem:[%s5768_s13 + $0x18] sm:$0xff] }
 0x704   : > { %1859 = vmatmul.mubr.f32.vlgmr.msra.gmra.mrb[4].mxu1 %v1770_v45  ;;  %v3533_v45 = vpack.c.bf16 %v1968_v40, %v1967_v38  ;;  %v2087_v38 = vld [vmem:[%s5770_s15 + $0xf0] sm:$0xff]  ;;  %v2090_v40 = vld [vmem:[%s5770_s15 + $0x108] sm:$0xff] }
 0x705   : > { %2160 = vmatprep.mubr.f32.mxu1 %v3885_v7 }
 0x720   : > { %v3863_v6 = vpop.permute.xlu0 %3862 }
 0x721   : > { %v3865_v47 = vunpack.i.h.bf16 %v3863_v6  ;;  %v3864_v54 = vunpack.i.l.bf16 %v3863_v6  ;;  %v1969_v6 = vld [vmem:[%s5768_s13 + $0x20] sm:$0xff] }
 0x723   : > { %v1255_v60 = vsel %vm5837_vm11, %v3864_v54, %v3865_v47  ;;  %v1970_v47 = vld [vmem:[%s5768_s13 + $0x28] sm:$0xff] }
 0x724   : > { %v1261_v4 = vsel %vm5838_vm12, 3.0, %v1255_v60  ;;  %v3536_v54 = vpack.c.bf16 %v1970_v47, %v1969_v6  ;;  %v1973_v60 = vld [vmem:[%s5768_s13 + $0x40] sm:$0xff] }
 0x725   : > { %1286 = vrot.lane.b32.xlu1 %v1261_v4, %s5830_s30  ;;  %v1285_v30 = vpop.permute.xlu0 %1284  ;;  %v3542_v0 = vpack.c.bf16 %v1974_v63, %v1973_v60  ;;  %v3545_v4 = vpack.c.bf16 %v1976_v3, %v1975_v1  ;;  %v1877_v6 = vld [vmem:[%s5767_s12] sm:$0x3]  ;;  %v2407_v1 = vld [vmem:[%s5772_s17 + $0x8] sm:$0xff]  ;;  %v2409_v3 = vld [vmem:[%s5772_s17 + $0x18] sm:$0xff] }
 0x726   : > { %v1293_v25 = vsel %vm5839_vm13, 4.0, %v1285_v30  ;;  %v2060_v30 = vld [vmem:[%s5770_s15 + $0x18] sm:$0xff]  ;;  %v1882_v47 = vrot.slane %v1877_v6, %v4225_v22  ;;  %v3640_v5 = vpack.c.bf16 %v2409_v3, %v2407_v1  ;;  %v2442_v1 = vld [vmem:[%s5772_s17 + $0x120] sm:$0xff]  ;;  %v2444_v3 = vld [vmem:[%s5772_s17 + $0x130] sm:$0xff] }
 0x727   : > { %v1302_v27 = vrot.slane %v1293_v25, 4  ;;  %v3558_v58 = vpack.c.bf16 %v2060_v30, %v2057_v23  ;;  %v2414_v23 = vld [vmem:[%s5772_s17 + $0x40] sm:$0xff]  ;;  %v2416_v30 = vld [vmem:[%s5772_s17 + $0x50] sm:$0xff] }
 0x729   : > { %v1304_v41 = vsel %vm4587_vm3, %v1293_v25, %v1302_v27  ;;  %v1289_v33 = vpop.permute.xlu0 %1288  ;;  %vm5841_vm3 = vcmp.gt.f32.partialorder %v4315_v56, %v4628_v50  ;;  %3559 = vmatpush1.bf16.msra.mxu1 %v3558_v58  ;;  %v2064_v25 = vld [vmem:[%s5770_s15 + $0x38] sm:$0xff] }
 0x72a   : > { %v1312_v31 = vrot.slane %v1304_v41, 4  ;;  %v1295_v62 = vsel %vm5841_vm3, 4.0, %v1289_v33  ;;  %v3560_v27 = vpack.c.bf16 %v2067_v26, %v2064_v25  ;;  %v2066_v41 = vld [vmem:[%s5770_s15 + $0x48] sm:$0xff]  ;;  %v2076_v33 = vld [vmem:[%s5770_s15 + $0x98] sm:$0xff]  ;;  %v3650_v26 = vpack.c.bf16 %v2416_v30, %v2414_v23 }
 0x72b   : > { %v3562_v29 = vpack.c.bf16 %v2066_v41, %v2063_v37  ;;  %v2421_v25 = vld [vmem:[%s5772_s17 + $0x78] sm:$0xff]  ;;  %v2418_v37 = vld [vmem:[%s5772_s17 + $0x60] sm:$0xff]  ;;  %v2420_v41 = vld [vmem:[%s5772_s17 + $0x70] sm:$0xff] }
 0x72c   : > { %3561 = vmatprep.subr.bf16.mxu1 %v3560_v27  ;;  %v2457_v23 = vld [vmem:[%s5772_s17 + $0x198] sm:$0xff] }
 0x72d   : > { %3563 = vmatpush1.bf16.msra.mxu1 %v3562_v29 }
 0x797   : > { %v1287_v49 = vpop.permute.xlu1 %1286 }
 0x798   : > { %v1294_v32 = vsel %vm5840_vm15, 4.0, %v1287_v49  ;;  %v2073_v49 = vld [vmem:[%s5770_s15 + $0x80] sm:$0xff] }
 0x799   : > { %v1314_v53 = vsel %vm4618_vm2, %v1294_v32, %v1312_v31  ;;  %v2070_v31 = vld [vmem:[%s5770_s15 + $0x68] sm:$0xff]  ;;  %vm3894_vm2 = vmmov 0  }
 0x79a   : > { %v1325_v46 = vrot.slane %v1314_v53, 4  ;;  %v2069_v53 = vld [vmem:[%s5770_s15 + $0x60] sm:$0xff] }
 0x79c   : > { %v1327_v28 = vsel %vm4630_vm0, %v1294_v32, %v1325_v46  ;;  %vm5843_vm0 = vmmov %vm5832_vm5  ;;  %v3564_v32 = vpack.c.bf16 %v2073_v49, %v2070_v31  ;;  %v2072_v46 = vld [vmem:[%s5770_s15 + $0x78] sm:$0xff]  ;;  %v3654_v49 = vpack.c.bf16 %v2420_v41, %v2418_v37 }
 0x79d   : > { %v1338_v24 = vrot.slane %v1327_v28, 4  ;;  %v3566_v11 = vpack.c.bf16 %v2072_v46, %v2069_v53  ;;  %v2079_v28 = vld [vmem:[%s5770_s15 + $0xb0] sm:$0xff]  ;;  %v2425_v31 = vld [vmem:[%s5772_s17 + $0x98] sm:$0xff]  ;;  %v2422_v53 = vld [vmem:[%s5772_s17 + $0x80] sm:$0xff] }
 0x79e   : > { %3565 = vmatprep.subr.bf16.mxu1 %v3564_v32  ;;  %v2424_v46 = vld [vmem:[%s5772_s17 + $0x90] sm:$0xff]  ;;  %v2461_v37 = vld [vmem:[%s5772_s17 + $0x1b8] sm:$0xff]  ;;  %vm5849_vm11 = vmmov %vm5843_vm0 }
 0x79f   : > { %v1340_v51 = vsel %vm4643_vm1, %v1295_v62, %v1338_v24  ;;  %3567 = vmatpush1.bf16.msra.mxu1 %v3566_v11  ;;  %v3568_v24 = vpack.c.bf16 %v2079_v28, %v2076_v33  ;;  %v2078_v62 = vld [vmem:[%s5770_s15 + $0xa8] sm:$0xff]  ;;  %vm5844_vm1 = vmmov %vm5836_vm10  ;;  %v2429_v33 = vld [vmem:[%s5772_s17 + $0xb8] sm:$0xff]  ;;  %v3658_v28 = vpack.c.bf16 %v2424_v46, %v2422_v53  ;;  %vm2681_vm10 = vcmask 1042432  }
 0x7a0   : > { %v1346_v17 = vadd.f32 %v1345_v34, %v1340_v51  ;;  %v2075_v34 = vld [vmem:[%s5770_s15 + $0x90] sm:$0xff]  ;;  %v2465_v53 = vld [vmem:[%s5772_s17 + $0x1d8] sm:$0xff] }
 0x7a1   : > { %v3570_v51 = vpack.c.bf16 %v2078_v62, %v2075_v34  ;;  %3569 = vmatprep.subr.bf16.mxu1 %v3568_v24  ;;  %v2426_v34 = vld [vmem:[%s5772_s17 + $0xa0] sm:$0xff]  ;;  %v2428_v62 = vld [vmem:[%s5772_s17 + $0xb0] sm:$0xff] }
 0x7a2   : > { %2696 = vrot.lane.b32.xlu1 %v1346_v17, %s5842_s5  ;;  %v2082_v17 = vld [vmem:[%s5770_s15 + $0xc8] sm:$0xff] }
 0x7a3   : > { %3571 = vmatpush1.bf16.msra.mxu1 %v3570_v51 }
 0x7d7   : > { %v1860_v56 = vpop.f32.mrb[4].mxu1 }
 0x7d8   : > { %v1861_v50 = vadd.f32 %v1860_v56, %v1790_v44  ;;  %v1862_v39 = vpop.f32.mrb[5].mxu1  ;;  %v2085_v44 = vld [vmem:[%s5770_s15 + $0xe0] sm:$0xff]  ;;  %v2084_v56 = vld [vmem:[%s5770_s15 + $0xd8] sm:$0xff] }
 0x7d9   : > { %v3572_v55 = vpack.c.bf16 %v2085_v44, %v2082_v17  ;;  %v2088_v39 = vld [vmem:[%s5770_s15 + $0xf8] sm:$0xff]  ;;  %v3662_v44 = vpack.c.bf16 %v2428_v62, %v2426_v34 }
 0x7da   : > { %v1864_v35 = vmax.f32 %v1861_v50, 0.0  ;;  %v3574_v50 = vpack.c.bf16 %v2084_v56, %v2081_v48  ;;  %v2433_v17 = vld [vmem:[%s5772_s17 + $0xd8] sm:$0xff]  ;;  %v2430_v48 = vld [vmem:[%s5772_s17 + $0xc0] sm:$0xff]  ;;  %v2432_v56 = vld [vmem:[%s5772_s17 + $0xd0] sm:$0xff] }
 0x7db   : > { %3573 = vmatprep.subr.bf16.mxu1 %v3572_v55  ;;  %v2469_v34 = vld [vmem:[%s5772_s17 + $0x1f8] sm:$0xff] }
 0x7dc   : > { %3226 = vmatmul.mubr.msk.f32.vlgmr.msra.gmra.mrb[8].mxu0 %vm5843_vm0, %v1864_v35  ;;  %3575 = vmatpush1.bf16.msra.mxu1 %v3574_v50 }
 0x7dd   : > { %3531 = vmatpush1.bf16.msra.mxu0 %v3530_v61  ;;  %v2091_v61 = vld [vmem:[%s5770_s15 + $0x110] sm:$0xff] }
 0x7de   : > { %3532 = vmatprep.subr.bf16.mxu0 %v3888_v13  ;;  %v3576_v35 = vpack.c.bf16 %v2091_v61, %v2088_v39  ;;  %v2437_v39 = vld [vmem:[%s5772_s17 + $0xf8] sm:$0xff]  ;;  %v3666_v61 = vpack.c.bf16 %v2432_v56, %v2430_v48 }
 0x7e0   : > { %3577 = vmatprep.subr.bf16.mxu1 %v3576_v35 }
 0x7e1   : > { %3534 = vmatpush1.bf16.msra.mxu0 %v3533_v45  ;;  %v3578_v45 = vpack.c.bf16 %v2090_v40, %v2087_v38  ;;  %v2434_v38 = vld [vmem:[%s5772_s17 + $0xe0] sm:$0xff]  ;;  %v2436_v40 = vld [vmem:[%s5772_s17 + $0xf0] sm:$0xff] }
 0x7e2   : > { %3535 = vmatprep.subr.bf16.mxu0 %v3888_v13 }
 0x7e3   : > { %3579 = vmatpush1.bf16.msra.mxu1 %v3578_v45 }
 0x7e4   : > { %3580 = vmatprep.subr.bf16.mxu1 %v3888_v13 }
 0x7e5   : > { %3537 = vmatpush1.bf16.msra.mxu0 %v3536_v54  ;;  %v1886_v54 = vrot.slane %v1877_v6, %v4274_v43  ;;  %v2441_v6 = vld [vmem:[%s5772_s17 + $0x118] sm:$0xff] }
 0x7e6   : > { %3538 = vmatprep.subr.bf16.mxu0 %v3888_v13 }
 0x7e9   : > { %3540 = vmatpush1.bf16.msra.mxu0 %v3539_v57 }
 0x7ea   : > { %3541 = vmatprep.subr.bf16.mxu0 %v3888_v13 }
 0x7ed   : > { %3543 = vmatpush1.bf16.msra.mxu0 %v3542_v0 }
 0x7ee   : > { %3544 = vmatprep.subr.bf16.mxu0 %v3888_v13 }
 0x7f1   : > { %3546 = vmatpush1.bf16.msra.mxu0 %v3545_v4  ;;  %v2406_v4 = vld [vmem:[%s5772_s17] sm:$0xff] }
 0x7f2   : > { %3547 = vmatprep.subr.bf16.mxu0 %v3888_v13  ;;  %v3642_v12 = vpack.c.bf16 %v2408_v8, %v2406_v4  ;;  %v2447_v4 = vld [vmem:[%s5772_s17 + $0x148] sm:$0xff]  ;;  %v3678_v8 = vpack.c.bf16 %v2444_v3, %v2442_v1 }
 0x7f5   : > { %3549 = vmatpush1.bf16.msra.mxu0 %v3548_v9  ;;  %v2411_v9 = vld [vmem:[%s5772_s17 + $0x28] sm:$0xff] }
 0x7f6   : > { %3550 = vmatprep.subr.bf16.mxu0 %v3888_v13 }
 0x7f9   : > { %3552 = vmatpush1.bf16.msra.mxu0 %v3551_v2  ;;  %v3644_v2 = vpack.c.bf16 %v2413_v10, %v2411_v9  ;;  %v2446_v10 = vld [vmem:[%s5772_s17 + $0x140] sm:$0xff] }
 0x7fa   : > { %3553 = vmatprep.subr.bf16.mxu0 %v3888_v13 }
 0x7fd   : > { %3555 = vmatpush1.bf16.msra.mxu0 %v3554_v16  ;;  %v2415_v16 = vld [vmem:[%s5772_s17 + $0x48] sm:$0xff] }
 0x7fe   : > { %3599 = vmatprep.subr.bf16.mxu0 %v3556_v20  ;;  %v3648_v20 = vpack.c.bf16 %v2417_v18, %v2415_v16  ;;  %v2450_v18 = vld [vmem:[%s5772_s17 + $0x160] sm:$0xff] }
 0x8af   : > { %v1958_v59 = vpop.f32.mrb[8].mxu0 }
 0x8b0   : > { %v1959_v36 = vadd.f32 %v1958_v59, %v1882_v47  ;;  %v1960_v57 = vpop.f32.mrb[9].mxu0  ;;  %v3670_v47 = vpack.c.bf16 %v2436_v40, %v2434_v38  ;;  %v2438_v59 = vld [vmem:[%s5772_s17 + $0x100] sm:$0xff]  ;;  %v2071_v40 = vld [vmem:[%s5770_s15 + $0x70] sm:$0xff] }
 0x8b1   : > { %v1961_v60 = vadd.f32 %v1960_v57, %v1886_v54  ;;  %v2443_v57 = vld [vmem:[%s5772_s17 + $0x128] sm:$0xff] }
 0x8b2   : > { %v1963_v0 = vmax.f32 %v1959_v36, 0.0  ;;  %v2440_v36 = vld [vmem:[%s5772_s17 + $0x110] sm:$0xff] }
 0x8b3   : > { %v1964_v63 = vmax.f32 %v1961_v60, 0.0  ;;  %v2445_v60 = vld [vmem:[%s5772_s17 + $0x138] sm:$0xff] }
 0x8b5   : > { %3227 = vmatprep.mubr.msk.f32.mxu0 %vm5844_vm1, %v1964_v63  ;;  %v3674_v63 = vpack.c.bf16 %v2440_v36, %v2438_v59  ;;  %v2083_v36 = vld [vmem:[%s5770_s15 + $0xd0] sm:$0xff] }
 0x8b6   : > { %2052 = vmatmul.mubr.f32.vlgmr.msra.gmra.mrb[10].mxu0 %v1963_v0  ;;  %v3676_v0 = vpack.c.bf16 %v2445_v60, %v2443_v57  ;;  %v2086_v57 = vld [vmem:[%s5770_s15 + $0xe8] sm:$0xff] }
 0x8b7   : > { %3601 = vmatpush1.bf16.msra.mxu0 %v3558_v58  ;;  %2306 = vmatprep.mubr.f32.mxu0 %v3885_v7  ;;  %v2419_v58 = vld [vmem:[%s5772_s17 + $0x68] sm:$0xff]  ;;  %v3593_v60 = vpack.c.bf16 %v2086_v57, %v2083_v36  ;;  %v2489_v36 = vld [vmem:[%s5772_s17 + $0x298] sm:$0xff] }
 0x8b8   : > { %3603 = vmatprep.subr.bf16.mxu0 %v3560_v27  ;;  %v3652_v27 = vpack.c.bf16 %v2421_v25, %v2419_v58  ;;  %v2454_v25 = vld [vmem:[%s5772_s17 + $0x180] sm:$0xff] }
 0x8bb   : > { %3605 = vmatpush1.bf16.msra.mxu0 %v3562_v29  ;;  %v2423_v29 = vld [vmem:[%s5772_s17 + $0x88] sm:$0xff] }
 0x8bc   : > { %3607 = vmatprep.subr.bf16.mxu0 %v3564_v32  ;;  %v3656_v32 = vpack.c.bf16 %v2425_v31, %v2423_v29  ;;  %v2458_v31 = vld [vmem:[%s5772_s17 + $0x1a0] sm:$0xff] }
 0x8bf   : > { %3609 = vmatpush1.bf16.msra.mxu0 %v3566_v11  ;;  %v2427_v11 = vld [vmem:[%s5772_s17 + $0xa8] sm:$0xff] }
 0x8c0   : > { %3611 = vmatprep.subr.bf16.mxu0 %v3568_v24  ;;  %v3660_v24 = vpack.c.bf16 %v2429_v33, %v2427_v11  ;;  %v2462_v33 = vld [vmem:[%s5772_s17 + $0x1c0] sm:$0xff] }
 0x8c3   : > { %3613 = vmatpush1.bf16.msra.mxu0 %v3570_v51  ;;  %v2431_v51 = vld [vmem:[%s5772_s17 + $0xc8] sm:$0xff] }
 0x8c4   : > { %3615 = vmatprep.subr.bf16.mxu0 %v3572_v55  ;;  %v3664_v55 = vpack.c.bf16 %v2433_v17, %v2431_v51  ;;  %v2059_v17 = vld [vmem:[%s5770_s15 + $0x10] sm:$0xff] }
 0x8c7   : > { %3617 = vmatpush1.bf16.msra.mxu0 %v3574_v50  ;;  %v2435_v50 = vld [vmem:[%s5772_s17 + $0xe8] sm:$0xff] }
 0x8c8   : > { %3619 = vmatprep.subr.bf16.mxu0 %v3576_v35  ;;  %v3668_v35 = vpack.c.bf16 %v2437_v39, %v2435_v50 }
 0x8cb   : > { %3621 = vmatpush1.bf16.msra.mxu0 %v3578_v45  ;;  %v2439_v45 = vld [vmem:[%s5772_s17 + $0x108] sm:$0xff] }
 0x8cc   : > { %3641 = vmatprep.subr.bf16.mxu0 %v3640_v5  ;;  %v3672_v54 = vpack.c.bf16 %v2441_v6, %v2439_v45  ;;  %v2449_v5 = vld [vmem:[%s5772_s17 + $0x158] sm:$0xff]  ;;  %v2074_v45 = vld [vmem:[%s5770_s15 + $0x88] sm:$0xff] }
 0x8cd   : > { %v3680_v9 = vpack.c.bf16 %v2449_v5, %v2447_v4  ;;  %v3587_v6 = vpack.c.bf16 %v2074_v45, %v2071_v40  ;;  %v2684_v5 = vld [vmem:[%s5774_s19 + $0x8] sm:$0xff]  ;;  %v2485_v45 = vld [vmem:[%s5772_s17 + $0x278] sm:$0xff] }
 0x8ce   : > { %3230 = vmatmul.mubr.msk.f32.vlgmr.msra.gmra.mrb[12].mxu0 %vm1364_vm9, %v4883_v52  ;;  %v2483_v40 = vld [vmem:[%s5772_s17 + $0x268] sm:$0xff] }
 0x8cf   : > { %3643 = vmatpush1.bf16.msra.mxu0 %v3642_v12  ;;  %v2448_v12 = vld [vmem:[%s5772_s17 + $0x150] sm:$0xff] }
 0x8d0   : > { %3645 = vmatprep.subr.bf16.mxu0 %v3644_v2  ;;  %v2451_v2 = vld [vmem:[%s5772_s17 + $0x168] sm:$0xff]  ;;  %v3682_v15 = vpack.c.bf16 %v2448_v12, %v2446_v10  ;;  %v2683_v10 = vld [vmem:[%s5774_s19] sm:$0xff]  ;;  %v2685_v12 = vld [vmem:[%s5774_s19 + $0x10] sm:$0xff] }
 0x8d1   : > { %v3684_v16 = vpack.c.bf16 %v2453_v14, %v2451_v2  ;;  %v2688_v2 = vld [vmem:[%s5774_s19 + $0x28] sm:$0xff]  ;;  %v2690_v14 = vld [vmem:[%s5774_s19 + $0x38] sm:$0xff] }
 0x8d3   : > { %3647 = vmatpush1.bf16.msra.mxu0 %v3646_v19  ;;  %v2452_v19 = vld [vmem:[%s5772_s17 + $0x170] sm:$0xff] }
 0x8d4   : > { %3649 = vmatprep.subr.bf16.mxu0 %v3648_v20  ;;  %v2455_v20 = vld [vmem:[%s5772_s17 + $0x188] sm:$0xff]  ;;  %v3686_v30 = vpack.c.bf16 %v2452_v19, %v2450_v18  ;;  %v2687_v18 = vld [vmem:[%s5774_s19 + $0x20] sm:$0xff]  ;;  %v2689_v19 = vld [vmem:[%s5774_s19 + $0x30] sm:$0xff] }
 0x8d5   : > { %v3688_v58 = vpack.c.bf16 %v2457_v23, %v2455_v20  ;;  %v2692_v20 = vld [vmem:[%s5774_s19 + $0x48] sm:$0xff]  ;;  %v2694_v23 = vld [vmem:[%s5774_s19 + $0x58] sm:$0xff] }
 0x8d7   : > { %3651 = vmatpush1.bf16.msra.mxu0 %v3650_v26  ;;  %v2456_v26 = vld [vmem:[%s5772_s17 + $0x190] sm:$0xff] }
 0x8d8   : > { %3653 = vmatprep.subr.bf16.mxu0 %v3652_v27  ;;  %v2459_v27 = vld [vmem:[%s5772_s17 + $0x1a8] sm:$0xff]  ;;  %v3690_v41 = vpack.c.bf16 %v2456_v26, %v2454_v25  ;;  %v2691_v25 = vld [vmem:[%s5774_s19 + $0x40] sm:$0xff]  ;;  %v2693_v26 = vld [vmem:[%s5774_s19 + $0x50] sm:$0xff] }
 0x8d9   : > { %v3692_v29 = vpack.c.bf16 %v2461_v37, %v2459_v27  ;;  %v3746_v27 = vpack.c.bf16 %v2693_v26, %v2691_v25  ;;  %v2466_v37 = vld [vmem:[%s5772_s17 + $0x1e0] sm:$0xff]  ;;  %v2500_v26 = vld [vmem:[%s5772_s17 + $0x2f0] sm:$0xff] }
 0x8da   : > { %v2498_v25 = vld [vmem:[%s5772_s17 + $0x2e0] sm:$0xff] }
 0x8db   : > { %3655 = vmatpush1.bf16.msra.mxu0 %v3654_v49  ;;  %v2460_v49 = vld [vmem:[%s5772_s17 + $0x1b0] sm:$0xff] }
 0x8dc   : > { %3657 = vmatprep.subr.bf16.mxu0 %v3656_v32  ;;  %v2463_v32 = vld [vmem:[%s5772_s17 + $0x1c8] sm:$0xff]  ;;  %v3694_v46 = vpack.c.bf16 %v2460_v49, %v2458_v31  ;;  %v2473_v49 = vld [vmem:[%s5772_s17 + $0x218] sm:$0xff] }
 0x8dd   : > { %v3696_v11 = vpack.c.bf16 %v2465_v53, %v2463_v32  ;;  %v2471_v31 = vld [vmem:[%s5772_s17 + $0x208] sm:$0xff]  ;;  %v5429_v53 = vld [vmem:[%s5771_s16] sm:$0x7] }
 0x8de   : > { %v3704_v32 = vpack.c.bf16 %v2473_v49, %v2471_v31  ;;  %v2502_v49 = vld [vmem:[%s5773_s18] sm:$0x3] }
 0x8df   : > { %3659 = vmatpush1.bf16.msra.mxu0 %v3658_v28  ;;  %v2464_v28 = vld [vmem:[%s5772_s17 + $0x1d0] sm:$0xff] }
 0x8e0   : > { %3661 = vmatprep.subr.bf16.mxu0 %v3660_v24  ;;  %v2467_v24 = vld [vmem:[%s5772_s17 + $0x1e8] sm:$0xff]  ;;  %v3698_v62 = vpack.c.bf16 %v2464_v28, %v2462_v33  ;;  %v2472_v33 = vld [vmem:[%s5772_s17 + $0x210] sm:$0xff]  ;;  %v2388_v28 = vrot.slane %v5429_v53, %v4225_v22 }
 0x8e1   : > { %v3700_v51 = vpack.c.bf16 %v2469_v34, %v2467_v24  ;;  %v2475_v24 = vld [vmem:[%s5772_s17 + $0x228] sm:$0xff]  ;;  %v2477_v34 = vld [vmem:[%s5772_s17 + $0x238] sm:$0xff] }
 0x8e3   : > { %3663 = vmatpush1.bf16.msra.mxu0 %v3662_v44  ;;  %v2062_v44 = vld [vmem:[%s5770_s15 + $0x28] sm:$0xff] }
 0x8e4   : > { %3665 = vmatprep.subr.bf16.mxu0 %v3664_v55  ;;  %v1983_v55 = vld [vmem:[%s5769_s14] sm:$0x1]  ;;  %v3581_v56 = vpack.c.bf16 %v2062_v44, %v2059_v17  ;;  %v3708_v44 = vpack.c.bf16 %v2477_v34, %v2475_v24 }
 0x8e7   : > { %3667 = vmatpush1.bf16.msra.mxu0 %v3666_v61  ;;  %v2065_v61 = vld [vmem:[%s5770_s15 + $0x40] sm:$0xff] }
 0x8e8   : > { %3669 = vmatprep.subr.bf16.mxu0 %v3668_v35  ;;  %v2068_v35 = vld [vmem:[%s5770_s15 + $0x58] sm:$0xff] }
 0x8e9   : > { %v3584_v38 = vpack.c.bf16 %v2068_v35, %v2065_v61  ;;  %v2478_v35 = vld [vmem:[%s5772_s17 + $0x240] sm:$0xff] }
 0x8eb   : > { %3671 = vmatpush1.bf16.msra.mxu0 %v3670_v47  ;;  %v2077_v47 = vld [vmem:[%s5770_s15 + $0xa0] sm:$0xff] }
 0x8ec   : > { %3673 = vmatprep.subr.bf16.mxu0 %v3672_v54  ;;  %v2080_v54 = vld [vmem:[%s5770_s15 + $0xb8] sm:$0xff] }
 0x8ed   : > { %v3590_v59 = vpack.c.bf16 %v2080_v54, %v2077_v47  ;;  %v2482_v47 = vld [vmem:[%s5772_s17 + $0x260] sm:$0xff]  ;;  %v2484_v54 = vld [vmem:[%s5772_s17 + $0x270] sm:$0xff] }
 0x8ee   : > { %v3718_v57 = vpack.c.bf16 %v2484_v54, %v2482_v47  ;;  %v2949_v47 = vld [vmem:[%s5776_s21 + $0x20] sm:$0xff]  ;;  %v2950_v54 = vld [vmem:[%s5776_s21 + $0x28] sm:$0xff] }
 0x8ef   : > { %3675 = vmatpush1.bf16.msra.mxu0 %v3674_v63  ;;  %v2089_v63 = vld [vmem:[%s5770_s15 + $0x100] sm:$0xff] }
 0x8f0   : > { %3677 = vmatprep.subr.bf16.mxu0 %v3676_v0  ;;  %v2092_v0 = vld [vmem:[%s5770_s15 + $0x118] sm:$0xff] }
 0x8f1   : > { %v3596_v1 = vpack.c.bf16 %v2092_v0, %v2089_v63  ;;  %v2486_v63 = vld [vmem:[%s5772_s17 + $0x280] sm:$0xff]  ;;  %v2488_v0 = vld [vmem:[%s5772_s17 + $0x290] sm:$0xff] }
 0x8f3   : > { %3679 = vmatpush1.bf16.msra.mxu0 %v3678_v8  ;;  %v2686_v8 = vld [vmem:[%s5774_s19 + $0x18] sm:$0xff] }
 0x8f4   : > { %3681 = vmatprep.subr.bf16.mxu0 %v3680_v9  ;;  %v3736_v9 = vpack.c.bf16 %v2686_v8, %v2684_v5  ;;  %v2490_v8 = vld [vmem:[%s5772_s17 + $0x2a0] sm:$0xff] }
 0x8f7   : > { %3683 = vmatpush1.bf16.msra.mxu0 %v3682_v15  ;;  %v3738_v15 = vpack.c.bf16 %v2685_v12, %v2683_v10  ;;  %v2495_v10 = vld [vmem:[%s5772_s17 + $0x2c8] sm:$0xff]  ;;  %v2497_v12 = vld [vmem:[%s5772_s17 + $0x2d8] sm:$0xff] }
 0x8f8   : > { %3685 = vmatprep.subr.bf16.mxu0 %v3684_v16  ;;  %v3740_v16 = vpack.c.bf16 %v2690_v14, %v2688_v2  ;;  %v3728_v14 = vpack.c.bf16 %v2497_v12, %v2495_v10  ;;  %v2959_v12 = vld [vmem:[%s5776_s21 + $0x70] sm:$0xff] }
 0x8fb   : > { %3687 = vmatpush1.bf16.msra.mxu0 %v3686_v30  ;;  %v3742_v30 = vpack.c.bf16 %v2689_v19, %v2687_v18  ;;  %v2499_v18 = vld [vmem:[%s5772_s17 + $0x2e8] sm:$0xff]  ;;  %v2501_v19 = vld [vmem:[%s5772_s17 + $0x2f8] sm:$0xff] }
 0x8fc   : > { %3689 = vmatprep.subr.bf16.mxu0 %v3688_v58  ;;  %v3744_v58 = vpack.c.bf16 %v2694_v23, %v2692_v20 }
 0x8ff   : > { %3691 = vmatpush1.bf16.msra.mxu0 %v3690_v41  ;;  %v2468_v41 = vld [vmem:[%s5772_s17 + $0x1f0] sm:$0xff] }
 0x900   : > { %3693 = vmatprep.subr.bf16.mxu0 %v3692_v29  ;;  %v3702_v29 = vpack.c.bf16 %v2468_v41, %v2466_v37 }
 0x903   : > { %3695 = vmatpush1.bf16.msra.mxu0 %v3694_v46  ;;  %v2392_v46 = vrot.slane %v5429_v53, %v4274_v43 }
 0x904   : > { %3697 = vmatprep.subr.bf16.mxu0 %v3696_v11  ;;  %v2470_v11 = vld [vmem:[%s5772_s17 + $0x200] sm:$0xff] }
 0x907   : > { %3699 = vmatpush1.bf16.msra.mxu0 %v3698_v62 }
 0x908   : > { %3701 = vmatprep.subr.bf16.mxu0 %v3700_v51  ;;  %v3706_v51 = vpack.c.bf16 %v2472_v33, %v2470_v11 }
 0x90b   : > { %3703 = vmatpush1.bf16.msra.mxu0 %v3702_v29 }
 0x90c   : > { %3705 = vmatprep.subr.bf16.mxu0 %v3704_v32  ;;  %v2507_v32 = vrot.slane %v2502_v49, %v4225_v22 }
 0x989   : > { %v2053_v48 = vpop.f32.mrb[10].mxu0 }
 0x98a   : > { %v2054_v50 = vadd.f32 %v2053_v48, %v1983_v55  ;;  %v2055_v39 = vpop.f32.mrb[11].mxu0  ;;  %v2474_v55 = vld [vmem:[%s5772_s17 + $0x220] sm:$0xff]  ;;  %v2476_v48 = vld [vmem:[%s5772_s17 + $0x230] sm:$0xff] }
 0x98b   : > { %v3710_v39 = vpack.c.bf16 %v2476_v48, %v2474_v55  ;;  %v2945_v55 = vld [vmem:[%s5776_s21] sm:$0xff]  ;;  %v2946_v48 = vld [vmem:[%s5776_s21 + $0x8] sm:$0xff] }
 0x98c   : > { %3228 = vmatmul.mubr.msk.f32.vlgmr.msra.gmra.mrb[6].mxu1 %vm1364_vm9, %v2054_v50 }
 0x98d   : > { %3582 = vmatpush3.bf16.msra.mxu1 %v3581_v56  ;;  %3298 = vmatprep.mubr.msk.f32.mxu1 %vm3894_vm2, %v3885_v7 }
 0x98e   : > { %3583 = vmatprep.subr.bf16.mxu1 %v3888_v13 }
 0x991   : > { %3585 = vmatpush3.bf16.msra.mxu1 %v3584_v38 }
 0x992   : > { %3586 = vmatprep.subr.bf16.mxu1 %v3888_v13 }
 0x995   : > { %3588 = vmatpush3.bf16.msra.mxu1 %v3587_v6 }
 0x996   : > { %3589 = vmatprep.subr.bf16.mxu1 %v3888_v13 }
 0x999   : > { %3591 = vmatpush3.bf16.msra.mxu1 %v3590_v59 }
 0x99a   : > { %3592 = vmatprep.subr.bf16.mxu1 %v3888_v13 }
 0x99d   : > { %3594 = vmatpush3.bf16.msra.mxu1 %v3593_v60 }
 0x99e   : > { %3595 = vmatprep.subr.bf16.mxu1 %v3888_v13 }
 0x9a1   : > { %3597 = vmatpush3.bf16.msra.mxu1 %v3596_v1  ;;  %v5359_v3 = vpop.f32.mrb[12].mxu0 }
 0x9a2   : > { %v5361_v4 = vpop.f32.mrb[13].mxu0  ;;  %3622 = vmatprep.subr.bf16.mxu1 %v3888_v13  ;;  %vm2400_vm4 = vcmp.eq.f32.partialorder %v5359_v3, %v2388_v28  ;;  %v2493_v3 = vld [vmem:[%s5772_s17 + $0x2b8] sm:$0xff] }
 0x9a3   : > { %vm2401_vm14 = vcmp.eq.f32.partialorder %v5361_v4, %v2392_v46  ;;  %v3722_v4 = vpack.c.bf16 %v2488_v0, %v2486_v63  ;;  %v2511_v46 = vrot.slane %v2502_v49, %v4274_v43  ;;  %v2953_v63 = vld [vmem:[%s5776_s21 + $0x40] sm:$0xff]  ;;  %v2954_v0 = vld [vmem:[%s5776_s21 + $0x48] sm:$0xff] }
 0x9a4   : > { %3299 = vmatmul.mubr.msk.f32.vlgmr.msra.gmra.mrb[8].mxu1 %vm1364_vm9, %v2054_v50  ;;  %v2481_v50 = vld [vmem:[%s5772_s17 + $0x258] sm:$0xff] }
 0x9a5   : > { %3624 = vmatpush3.bf16.msra.mxu1 %v3581_v56  ;;  %3325 = vmatprep.mubr.msk.f32.mxu1 %vm3894_vm2, %v3885_v7  ;;  %v2479_v56 = vld [vmem:[%s5772_s17 + $0x248] sm:$0xff] }
 0x9a6   : > { %3625 = vmatprep.subr.bf16.mxu1 %v3888_v13  ;;  %v3712_v61 = vpack.c.bf16 %v2481_v50, %v2479_v56 }
 0x9a9   : > { %3627 = vmatpush3.bf16.msra.mxu1 %v3584_v38  ;;  %v2480_v38 = vld [vmem:[%s5772_s17 + $0x250] sm:$0xff] }
 0x9aa   : > { %3628 = vmatprep.subr.bf16.mxu1 %v3888_v13 }
 0x9ad   : > { %3630 = vmatpush3.bf16.msra.mxu1 %v3587_v6  ;;  %v3716_v6 = vpack.c.bf16 %v2485_v45, %v2483_v40  ;;  %v2947_v40 = vld [vmem:[%s5776_s21 + $0x10] sm:$0xff]  ;;  %v2948_v45 = vld [vmem:[%s5776_s21 + $0x18] sm:$0xff] }
 0x9ae   : > { %3631 = vmatprep.subr.bf16.mxu1 %v3888_v13 }
 0x9b1   : > { %3633 = vmatpush3.bf16.msra.mxu1 %v3590_v59  ;;  %v2487_v59 = vld [vmem:[%s5772_s17 + $0x288] sm:$0xff] }
 0x9b2   : > { %3634 = vmatprep.subr.bf16.mxu1 %v3888_v13 }
 0x9b5   : > { %3636 = vmatpush3.bf16.msra.mxu1 %v3593_v60  ;;  %v3720_v60 = vpack.c.bf16 %v2489_v36, %v2487_v59  ;;  %v3767_v59 = vpack.c.bf16 %v2950_v54, %v2949_v47  ;;  %v2951_v36 = vld [vmem:[%s5776_s21 + $0x30] sm:$0xff] }
 0x9b6   : > { %3637 = vmatprep.subr.bf16.mxu1 %v3888_v13 }
 0x9b9   : > { %3639 = vmatpush3.bf16.msra.mxu1 %v3596_v1  ;;  %v2491_v1 = vld [vmem:[%s5772_s17 + $0x2a8] sm:$0xff] }
 0x9ba   : > { %3737 = vmatprep.subr.bf16.mxu1 %v3736_v9  ;;  %v3724_v5 = vpack.c.bf16 %v2493_v3, %v2491_v1  ;;  %v3773_v1 = vpack.c.bf16 %v2954_v0, %v2953_v63  ;;  %v2955_v3 = vld [vmem:[%s5776_s21 + $0x50] sm:$0xff] }
 0x9bc   : > { %3326 = vmatmul.mubr.msk.f32.vlgmr.msra.gmra.mrb[10].mxu1 %vm1364_vm9, %v4883_v52  ;;  %v2697_v52 = vpop.permute.xlu1 %2696  ;;  %vm5845_vm9 = vmmov %vm5843_vm0 }
 0x9bd   : > { %3739 = vmatpush1.bf16.msra.mxu1 %v3738_v15  ;;  %2764 = vmatprep.mubr.f32.mxu1 %v3885_v7 }
 0x9be   : > { %3741 = vmatprep.subr.bf16.mxu1 %v3740_v16 }
 0x9c1   : > { %3743 = vmatpush1.bf16.msra.mxu1 %v3742_v30 }
 0x9c2   : > { %3745 = vmatprep.subr.bf16.mxu1 %v3744_v58 }
 0x9c5   : > { %3747 = vmatpush1.bf16.msra.mxu1 %v3746_v27 }
 0x9c6   : > { %3749 = vmatprep.subr.bf16.mxu1 %v3736_v9  ;;  %v2492_v9 = vld [vmem:[%s5772_s17 + $0x2b0] sm:$0xff] }
 0x9c7   : > { %v3726_v2 = vpack.c.bf16 %v2492_v9, %v2490_v8  ;;  %v2957_v8 = vld [vmem:[%s5776_s21 + $0x60] sm:$0xff]  ;;  %v2958_v9 = vld [vmem:[%s5776_s21 + $0x68] sm:$0xff] }
 0x9c8   : > { %3235 = vmatmul.mubr.msk.f32.vlgmr.msra.gmra.mrb[12].mxu1 %vm5845_vm9, %v2697_v52  ;;  %v2396_v52 = vrot.slane %v5429_v53, %v1452_v42  ;;  %v3779_v10 = vpack.c.bf16 %v2958_v9, %v2957_v8  ;;  %vm2982_vm9 = vcmask 916480  }
 0x9c9   : > { %3751 = vmatpush1.bf16.msra.mxu1 %v3738_v15  ;;  %2838 = vmatprep.mubr.f32.mxu1 %v3885_v7  ;;  %v2494_v15 = vld [vmem:[%s5772_s17 + $0x2c0] sm:$0xff] }
 0x9ca   : > { %3753 = vmatprep.subr.bf16.mxu1 %v3740_v16  ;;  %v2496_v16 = vld [vmem:[%s5772_s17 + $0x2d0] sm:$0xff] }
 0x9cb   : > { %v3730_v23 = vpack.c.bf16 %v2496_v16, %v2494_v15  ;;  %v2961_v15 = vld [vmem:[%s5776_s21 + $0x80] sm:$0xff]  ;;  %v2962_v16 = vld [vmem:[%s5776_s21 + $0x88] sm:$0xff] }
 0x9cd   : > { %3755 = vmatpush1.bf16.msra.mxu1 %v3742_v30 }
 0x9ce   : > { %3757 = vmatprep.subr.bf16.mxu1 %v3744_v58  ;;  %v3732_v58 = vpack.c.bf16 %v2501_v19, %v2499_v18  ;;  %v3785_v18 = vpack.c.bf16 %v2962_v16, %v2961_v15  ;;  %v2963_v19 = vld [vmem:[%s5776_s21 + $0x90] sm:$0xff] }
 0x9d1   : > { %3759 = vmatpush1.bf16.msra.mxu1 %v3746_v27  ;;  %v3734_v27 = vpack.c.bf16 %v2500_v26, %v2498_v25  ;;  %v2967_v26 = vld [vmem:[%s5776_s21 + $0xb0] sm:$0xff] }
 0x9d2   : > { %3760 = vmatprep.subr.bf16.mxu1 %v3888_v13 }
 0xa5f   : > { %v2162_v62 = vpop.f32.mrb[6].mxu1 }
 0xa60   : > { %v2164_v17 = vpop.f32.mrb[7].mxu1 }
 0xa61   : > { %3232 = vmatprep.mubr.msk.f32.mxu0 %vm2401_vm14, %v2164_v17 }
 0xa62   : > { %3233 = vmatmul.mubr.msk.f32.vlgmr.msra.gmra.mrb[14].mxu0 %vm2400_vm4, %v2162_v62 }
 0xa63   : > { %3707 = vmatpush1.bf16.msra.mxu0 %v3706_v51  ;;  %2649 = vmatprep.mubr.f32.mxu0 %v3885_v7  ;;  %v3714_v7 = vpack.c.bf16 %v2480_v38, %v2478_v35 }
 0xa64   : > { %3709 = vmatprep.subr.bf16.mxu0 %v3708_v44 }
 0xa67   : > { %3711 = vmatpush1.bf16.msra.mxu0 %v3710_v39 }
 0xa68   : > { %3713 = vmatprep.subr.bf16.mxu0 %v3712_v61  ;;  %v3761_v61 = vpack.c.bf16 %v2946_v48, %v2945_v55 }
 0xa6b   : > { %3715 = vmatpush1.bf16.msra.mxu0 %v3714_v7 }
 0xa6c   : > { %3717 = vmatprep.subr.bf16.mxu0 %v3716_v6  ;;  %v3764_v6 = vpack.c.bf16 %v2948_v45, %v2947_v40 }
 0xa6f   : > { %3719 = vmatpush1.bf16.msra.mxu0 %v3718_v57  ;;  %v2952_v57 = vld [vmem:[%s5776_s21 + $0x38] sm:$0xff] }
 0xa70   : > { %3721 = vmatprep.subr.bf16.mxu0 %v3720_v60  ;;  %v3770_v60 = vpack.c.bf16 %v2952_v57, %v2951_v36 }
 0xa73   : > { %3723 = vmatpush1.bf16.msra.mxu0 %v3722_v4  ;;  %v2956_v4 = vld [vmem:[%s5776_s21 + $0x58] sm:$0xff] }
 0xa74   : > { %3725 = vmatprep.subr.bf16.mxu0 %v3724_v5  ;;  %v3776_v5 = vpack.c.bf16 %v2956_v4, %v2955_v3 }
 0xa77   : > { %v2233_v20 = vpop.f32.mrb[8].mxu1  ;;  %3727 = vmatpush1.bf16.msra.mxu0 %v3726_v2  ;;  %v2960_v2 = vld [vmem:[%s5776_s21 + $0x78] sm:$0xff] }
 0xa78   : > { %v3300_v30 = vpop.f32.mrb[9].mxu1  ;;  %3729 = vmatprep.subr.bf16.mxu0 %v3728_v14  ;;  %v3782_v14 = vpack.c.bf16 %v2960_v2, %v2959_v12 }
 0xa79   : > { %v2965_v30 = vld [vmem:[%s5776_s21 + $0xa0] sm:$0xff] }
 0xa7b   : > { %3731 = vmatpush1.bf16.msra.mxu0 %v3730_v23 }
 0xa7c   : > { %3733 = vmatprep.subr.bf16.mxu0 %v3732_v58  ;;  %v2966_v58 = vld [vmem:[%s5776_s21 + $0xa8] sm:$0xff] }
 0xa7d   : > { %v3791_v25 = vpack.c.bf16 %v2966_v58, %v2965_v30 }
 0xa7f   : > { %3735 = vmatpush1.bf16.msra.mxu0 %v3734_v27  ;;  %v2968_v27 = vld [vmem:[%s5776_s21 + $0xb8] sm:$0xff] }
 0xa8f   : > { %v2379_v37 = vpop.f32.mrb[10].mxu1 }
 0xa90   : > { %vm2402_vm5 = vcmp.eq.f32.partialorder %v2379_v37, %v2396_v52  ;;  %v3327_v41 = vpop.f32.mrb[11].mxu1  ;;  %v3794_v52 = vpack.c.bf16 %v2968_v27, %v2967_v26  ;;  %v2969_v37 = vld [vmem:[%s5776_s21 + $0xc0] sm:$0xff] }
 0xa91   : > { %3234 = vmatmul.mubr.msk.f32.vlgmr.msra.gmra.mrb[14].mxu0 %vm2402_vm5, %v2233_v20  ;;  %v2964_v20 = vld [vmem:[%s5776_s21 + $0x98] sm:$0xff]  ;;  %v2970_v41 = vld [vmem:[%s5776_s21 + $0xc8] sm:$0xff]  ;;  %vm5868_vm5 = vcmask 1043456  }
 0xa92   : > { %v3788_v23 = vpack.c.bf16 %v2964_v20, %v2963_v19  ;;  %v3797_v49 = vpack.c.bf16 %v2970_v41, %v2969_v37 }
 0xa9b   : > { %v5531_v29 = vpop.f32.mrb[12].mxu1 }
 0xa9c   : > { %v5533_v31 = vpop.f32.mrb[13].mxu1 }
 0xb64   : > { %v2651_v11 = vpop.f32.mrb[14].mxu0 }
 0xb65   : > { %v3811_v21 = vadd.f32 %v2651_v11, %v2507_v32  ;;  %v2653_v33 = vpop.f32.mrb[15].mxu0  ;;  %v2971_v32 = vld [vmem:[%s5776_s21 + $0xd0] sm:$0xff] }
 0xb66   : > { %v3812_v42 = vadd.f32 %v2653_v33, %v2511_v46  ;;  %v2972_v46 = vld [vmem:[%s5776_s21 + $0xd8] sm:$0xff]  ;;  %v2974_v33 = vld [vmem:[%s5776_s21 + $0xe8] sm:$0xff] }
 0xb67   : > { %v2656_v53 = vmax.f32 %v3811_v21, 0.0  ;;  %v3800_v11 = vpack.c.bf16 %v2972_v46, %v2971_v32  ;;  %v2973_v21 = vld [vmem:[%s5776_s21 + $0xe0] sm:$0xff] }
 0xb68   : > { %v2657_v28 = vmax.f32 %v3812_v42, 0.0  ;;  %v3803_v42 = vpack.c.bf16 %v2974_v33, %v2973_v21 }
 0xb69   : > { %v2659_v24 = vrot.slane %v2656_v53, 7  ;;  %v2664_v34 = vrot.slane %v2656_v53, 6 }
 0xb6a   : > { %v2665_v62 = vrot.slane %v2657_v28, 6  ;;  %v2673_v51 = vrot.slane %v2657_v28, 5  ;;  %v2845_v28 = vld [vmem:[%s5775_s20] ss:$8 sm:$0x3] }
 0xb6b   : > { %2660 = vrot.lane.b32.xlu0 %v2659_v24, %s5846_s7  ;;  %2666 = vrot.lane.b32.xlu1 %v2664_v34, %s5847_s28  ;;  %v3238_v24 = vld [vmem:[%s5775_s20 + $0x2] ss:$8 sm:$0x3]  ;;  %v3240_v34 = vld [vmem:[%s5775_s20 + $0x4] ss:$8 sm:$0x3]  ;;  %s750_s7 = scalar_lea.vmem %s5778_s23, %s4078_s29 }
 0xb6c   : > { %v2884_v55 = vrot.slane %v3238_v24, %v4225_v22  ;;  %v2918_v16 = vrot.slane %v3240_v34, %v4225_v22 }
 0xb6e   : > { %vm5694_vm0 = vcmp.eq.f32.partialorder %v5531_v29, %v2884_v55 }
 0xb6f   : > { %2668 = vrot.lane.b32.xlu0 %v2665_v62, %s5847_s28  ;;  %2674 = vrot.lane.b32.xlu1 %v2673_v51, %s5848_s26  ;;  %v2850_v51 = vrot.slane %v2845_v28, %v4225_v22 }
 0xb71   : > { %vm5679_vm13 = vcmp.eq.f32.partialorder %v5531_v29, %v2850_v51 }
 0xbdd   : > { %v2667_v17 = vpop.permute.xlu1 %2666  ;;  %v2661_v44 = vpop.permute.xlu0 %2660 }
 0xbde   : > { %v2678_v50 = vsel %vm2677_vm6, %v2656_v53, %v2661_v44  ;;  %v3237_v53 = vld [vmem:[%s5775_s20 + $0x1] ss:$8 sm:$0x3]  ;;  %vm5869_vm6 = vmmov %vm5868_vm5 }
 0xbdf   : > { %v2867_v62 = vrot.slane %v3237_v53, %v4225_v22 }
 0xbe1   : > { %v2669_v56 = vpop.permute.xlu0 %2668  ;;  %v2675_v35 = vpop.permute.xlu1 %2674  ;;  %vm5674_vm12 = vcmp.eq.f32.partialorder %v5531_v29, %v2867_v62 }
 0xbe2   : > { %v2671_v39 = vsel %vm2670_vm7, %v2667_v17, %v2669_v56  ;;  %v2871_v17 = vrot.slane %v3237_v53, %v4274_v43  ;;  %v2854_v56 = vrot.slane %v2845_v28, %v4274_v43  ;;  %vm5870_vm7 = vmmov %vm5868_vm5 }
 0xbe3   : > { %v2680_v38 = vsel %vm2679_vm8, %v2678_v50, %v2671_v39  ;;  %v2888_v50 = vrot.slane %v3238_v24, %v4274_v43  ;;  %v2922_v39 = vrot.slane %v3240_v34, %v4274_v43  ;;  %vm5871_vm8 = vmmov %vm5868_vm5 }
 0xbe4   : > { %v2682_v7 = vsel %vm2681_vm10, %v2680_v38, %v2675_v35  ;;  %vm5684_vm15 = vcmp.eq.f32.partialorder %v5533_v31, %v2871_v17  ;;  %vm5704_vm2 = vcmp.eq.f32.partialorder %v5533_v31, %v2854_v56  ;;  %vm2925_vm10 = vcmp.eq.f32.partialorder %v5531_v29, %v2918_v16 }
 0xbe5   : > { %3236 = vmatmul.mubr.msk.f32.vlgmr.msra.gmra.mrb[14].mxu1 %vm5849_vm11, %v2682_v7  ;;  %vm5709_vm14 = vcmp.eq.f32.partialorder %v5533_v31, %v2888_v50  ;;  %vm5714_vm4 = vcmp.eq.f32.partialorder %v5533_v31, %v2922_v39 }
 0xbe6   : > { %3762 = vmatpush1.bf16.msra.mxu1 %v3761_v61 }
 0xbe7   : > { %3763 = vmatprep.subr.bf16.mxu1 %v3888_v13 }
 0xbea   : > { %3765 = vmatpush1.bf16.msra.mxu1 %v3764_v6 }
 0xbeb   : > { %3766 = vmatprep.subr.bf16.mxu1 %v3888_v13 }
 0xbee   : > { %3768 = vmatpush1.bf16.msra.mxu1 %v3767_v59 }
 0xbef   : > { %3769 = vmatprep.subr.bf16.mxu1 %v3888_v13 }
 0xbf2   : > { %3771 = vmatpush1.bf16.msra.mxu1 %v3770_v60 }
 0xbf3   : > { %3772 = vmatprep.subr.bf16.mxu1 %v3888_v13 }
 0xbf6   : > { %3774 = vmatpush1.bf16.msra.mxu1 %v3773_v1 }
 0xbf7   : > { %3775 = vmatprep.subr.bf16.mxu1 %v3888_v13 }
 0xbfa   : > { %3777 = vmatpush1.bf16.msra.mxu1 %v3776_v5 }
 0xbfb   : > { %3778 = vmatprep.subr.bf16.mxu1 %v3888_v13 }
 0xbfe   : > { %3780 = vmatpush1.bf16.msra.mxu1 %v3779_v10 }
 0xbff   : > { %3781 = vmatprep.subr.bf16.mxu1 %v3888_v13 }
 0xc02   : > { %3783 = vmatpush1.bf16.msra.mxu1 %v3782_v14 }
 0xc03   : > { %3784 = vmatprep.subr.bf16.mxu1 %v3888_v13 }
 0xc06   : > { %3786 = vmatpush1.bf16.msra.mxu1 %v3785_v18  ;;  %v3241_v18 = vld [vmem:[%s5777_s22] ss:$0 sm:$0xff] }
 0xc07   : > { %3787 = vmatprep.subr.bf16.mxu1 %v3888_v13 }
 0xc0a   : > { %3789 = vmatpush1.bf16.msra.mxu1 %v3788_v23 }
 0xc0b   : > { %3790 = vmatprep.subr.bf16.mxu1 %v3888_v13 }
 0xc0e   : > { %3792 = vmatpush1.bf16.msra.mxu1 %v3791_v25 }
 0xc0f   : > { %3793 = vmatprep.subr.bf16.mxu1 %v3888_v13 }
 0xc12   : > { %3795 = vmatpush1.bf16.msra.mxu1 %v3794_v52 }
 0xc13   : > { %3796 = vmatprep.subr.bf16.mxu1 %v3888_v13 }
 0xc16   : > { %3798 = vmatpush1.bf16.msra.mxu1 %v3797_v49 }
 0xc17   : > { %3799 = vmatprep.subr.bf16.mxu1 %v3888_v13 }
 0xc1a   : > { %3801 = vmatpush1.bf16.msra.mxu1 %v3800_v11 }
 0xc1b   : > { %3802 = vmatprep.subr.bf16.mxu1 %v3888_v13  ;;  %v3239_v13 = vld [vmem:[%s5775_s20 + $0x3] ss:$8 sm:$0x3] }
 0xc1c   : > { %v2905_v44 = vrot.slane %v3239_v13, %v4274_v43  ;;  %v2901_v48 = vrot.slane %v3239_v13, %v4225_v22 }
 0xc1e   : > { %3804 = vmatpush1.bf16.msra.mxu1 %v3803_v42  ;;  %vm5689_vm3 = vcmp.eq.f32.partialorder %v5533_v31, %v2905_v44  ;;  %vm5699_vm1 = vcmp.eq.f32.partialorder %v5531_v29, %v2901_v48 }
 0xcb8   : > { %v2840_v7 = vpop.f32.mrb[14].mxu1 }
 0xcb9   : > { %v2842_v59 = vpop.f32.mrb[15].mxu1  ;;  %v2859_v36 = vsel %vm5679_vm13, %v2840_v7, 0.0  ;;  %v2876_v57 = vsel %vm5674_vm12, %v2840_v7, 0.0  ;;  %v2893_v60 = vsel %vm5694_vm0, %v2840_v7, 0.0  ;;  %v2910_v63 = vsel %vm5699_vm1, %v2840_v7, 0.0 }
 0xcba   : > { %v2860_v0 = vsel %vm5704_vm2, %v2842_v59, 0.0  ;;  %v2877_v31 = vsel %vm5684_vm15, %v2842_v59, 0.0  ;;  %v2931_v1 = vrot.slane %v2876_v57, 4  ;;  %v2894_v3 = vsel %vm5709_vm14, %v2842_v59, 0.0 }
 0xcbb   : > { %v2932_v4 = vrot.slane %v2877_v31, 4  ;;  %v2911_v5 = vsel %vm5689_vm3, %v2842_v59, 0.0  ;;  %v2937_v8 = vrot.slane %v2910_v63, 4  ;;  %v2928_v9 = vsel %vm5714_vm4, %v2842_v59, 0.0 }
 0xcbc   : > { %v2941_v10 = vsel %vm5868_vm5, %v2859_v36, %v2931_v1  ;;  %v2938_v12 = vrot.slane %v2911_v5, 4 }
 0xcbd   : > { %v2942_v2 = vsel %vm5869_vm6, %v2860_v0, %v2932_v4  ;;  %v2943_v14 = vsel %vm5870_vm7, %v2893_v60, %v2937_v8 }
 0xcbe   : > { %3242 = vmatprep.mubr.msk.f32.mxu1 %vm2982_vm9, %v2942_v2  ;;  %v2944_v15 = vsel %vm5871_vm8, %v2894_v3, %v2938_v12 }
 0xcbf   : > { %3057 = vmatmul.mubr.f32.vlgmr.msra.gmra.mrb[16].mxu1 %v2941_v10 }
 0xcc0   : > { %3243 = vmatprep.mubr.msk.f32.mxu1 %vm2982_vm9, %v2944_v15 }
 0xcc3   : > { %3062 = vmatmul.mubr.f32.gmra.mrb[18].mxu1 %v2943_v14 }
 0xcc4   : > { %3244 = vmatprep.mubr.msk.f32.mxu1 %vm2982_vm9, %v2928_v9 }
 0xcc7   : > { %3245 = vmatmul.mubr.msk.f32.gmra.mrb[20].mxu1 %vm2925_vm10, %v2840_v7 }
 0xd92   : > { %v3058_v19 = vpop.f32.mrb[16].mxu1 }
 0xd93   : > { %v3059_v20 = vadd.f32 %v3241_v18, %v3058_v19  ;;  %v3060_v23 = vpop.f32.mrb[17].mxu1 }
 0xd95   : > { %v3072_v30 = vmul.f32 0.5, %v3059_v20 }
 0xd96   : > { %v3063_v58 = vpop.f32.mrb[18].mxu1 }
 0xd97   : > { %3871 = vtanh.f32 %v3072_v30  ;;  %v3064_v25 = vadd.f32 %v3241_v18, %v3063_v58  ;;  %v3065_v26 = vpop.f32.mrb[19].mxu1 }
 0xd99   : > { %v3073_v22 = vmul.f32 0.5, %v3064_v25 }
 0xd9a   : > { %v3068_v27 = vpop.f32.mrb[20].mxu1 }
 0xd9b   : > { %3873 = vtanh.f32 %v3073_v22  ;;  %v3069_v52 = vadd.f32 %v3241_v18, %v3068_v27  ;;  %v3070_v37 = vpop.f32.mrb[21].mxu1 }
 0xd9d   : > { %v3074_v29 = vmul.f32 0.5, %v3069_v52 }
 0xd9f   : > { %3875 = vtanh.f32 %v3074_v29 }
 0xda1   : > { %v3872_v41 = vpop.eup %3871 }
 0xda2   : > { %v3078_v49 = vadd.f32 1.0, %v3872_v41 }
 0xda4   : > { %v3081_v32 = vmul.f32 0.5, %v3078_v49 }
 0xda5   : > { %v3874_v46 = vpop.eup %3873 }
 0xda6   : > { %3084 = vst [vmem:[%s750_s7] sm:$0xff] %v3081_v32  ;;  %v3079_v11 = vadd.f32 1.0, %v3874_v46 }
 0xda8   : > { %v3082_v21 = vmul.f32 0.5, %v3079_v11 }
 0xda9   : > { %v3876_v33 = vpop.eup %3875 }
 0xdaa   : > { %3085 = vst [vmem:[%s750_s7 + $0x8] sm:$0xff] %v3082_v21  ;;  %v3080_v42 = vadd.f32 1.0, %v3876_v33 }
 0xdac   : > { %v3083_v53 = vmul.f32 0.5, %v3080_v42 }
 0xdae   : > { %3086 = vst [vmem:[%s750_s7 + $0x10] sm:$0xf] %v3083_v53 }
 0xdaf PF: > { %s33_s4 = sadd.s32 1, %s3883_s4  }
 0xdb0   : > { %p30_p4 = scmp.ge.s32.totalorder %s33_s4, 4  }
 0xdb2   :  { %32 = sbr.rel (!%p30_p4) target bundleno = 9 (0x9), region = 154 }

</bundles_post_ra>
